<compile_context>
chip_gen: v5e
topology: v5e:2x2
jax: 0.10.0
libtpu: 0.0.40
codegen_flags: <defaults>
</compile_context>

<pallas_src>
import jax
import jax.numpy as jnp
from jax.experimental import pallas as pl
from jax.experimental.pallas import tpu as pltpu


HIDDEN_DIMS = (512, 256, 128, 64, 32, 1)


# ----------------------------------------------------------------------------
# Pallas kernel: full MLP forward for one (tile_b, input_size) batch tile.
# ----------------------------------------------------------------------------
def mlp_kernel(x_ref,
               w1_ref, b1_ref,
               w2_ref, b2_ref,
               w3_ref, b3_ref,
               w4_ref, b4_ref,
               w5_ref, b5_ref,
               w6_ref, b6_ref,
               o_ref):
    h = x_ref[...]                                   # (tile_b, in_dim) f32

    def linear_relu(h, w_ref, b_ref):
        y = jnp.dot(h, w_ref[...], preferred_element_type=jnp.float32)  # MXU
        return jnp.maximum(y + b_ref[...], 0.0)      # bias (1, out) broadcasts

    h = linear_relu(h, w1_ref, b1_ref)               # (tile_b, 512)
    h = linear_relu(h, w2_ref, b2_ref)               # (tile_b, 256)
    h = linear_relu(h, w3_ref, b3_ref)               # (tile_b, 128)
    h = linear_relu(h, w4_ref, b4_ref)               # (tile_b, 64)
    h = linear_relu(h, w5_ref, b5_ref)               # (tile_b, 32)

    # Final Linear(32, 1): VPU multiply + XLU lane reduce; emit the result as a
    # lane-dense (1, tile_b) row so the store is an unmasked vst.
    y = jnp.sum(h * w6_ref[...], axis=-1)            # w6 stored (1, 32) -> (tile_b,)
    o_ref[...] = (y[None, :] + b6_ref[...]).astype(o_ref.dtype)   # (1, tile_b)


# ----------------------------------------------------------------------------
# Wrapper
# ----------------------------------------------------------------------------
def _pick_tile_b(batch):
    """MXU-aligned batch tile.  256 fills the v6e/v7x 2x256x256 MXU (and is a
    multiple of 128 for v5e's 4x128x128); 1024 amortizes per-step overhead at
    big batches.  Caps keep >= 2 grid steps at realistic sizes (megacore)."""
    if batch >= 4096:
        return 1024
    if batch >= 512:
        return 256
    return 128


def regression_mlp_forward(x, params, *, tile_b=None):
    """x: (B, input_size) f32.
    params: [(W1,b1) ... (W6,b6)] with W1..W5 pre-transposed as (in, out),
    biases (1, out); W6 stored as (1, 32), b6 as (1, 1)."""
    B, in_dim = x.shape
    if tile_b is None:
        tile_b = _pick_tile_b(B)

    # Zero-pad batch up to a multiple of tile_b; padded rows are sliced off.
    n_tiles = pl.cdiv(B, tile_b)
    B_pad = n_tiles * tile_b
    if B_pad != B:
        x = jnp.pad(x, ((0, B_pad - B), (0, 0)))

    # Grid-invariant operands: constant block index (0, 0) => fetched once,
    # resident in VMEM for the whole grid.
    const_map = lambda i: (0, 0)
    weight_specs = []
    flat_params = []
    for (w, b) in params:
        weight_specs.append(pl.BlockSpec(w.shape, const_map))
        weight_specs.append(pl.BlockSpec(b.shape, const_map))
        flat_params.extend([w, b])

    grid_spec = pltpu.PrefetchScalarGridSpec(
        num_scalar_prefetch=0,
        grid=(n_tiles,),
        in_specs=[pl.BlockSpec((tile_b, in_dim), lambda i: (i, 0))]
                 + weight_specs,
        # Lane-dense output: one (1, tile_b) row block per grid step.
        out_specs=pl.BlockSpec((1, tile_b), lambda i: (0, i)),
    )

    dims = (in_dim,) + HIDDEN_DIMS
    flops = 2 * B_pad * sum(dims[i] * dims[i + 1] for i in range(len(dims) - 1))
    param_bytes = sum(int(w.size) * w.dtype.itemsize + int(b.size) * b.dtype.itemsize
                      for (w, b) in params)
    cost = pl.CostEstimate(
        flops=flops,
        transcendentals=0,
        bytes_accessed=int(x.size) * x.dtype.itemsize + param_bytes + B_pad * 4,
    )

    out_row = pl.pallas_call(
        mlp_kernel,
        out_shape=jax.ShapeDtypeStruct((1, B_pad), jnp.float32),
        grid_spec=grid_spec,
        compiler_params=pltpu.CompilerParams(
            dimension_semantics=("parallel",)),
        cost_estimate=cost,
    )(x, *flat_params)

    return out_row[0, :B, None]                      # back to (B, 1)


# ----------------------------------------------------------------------------
# Deterministic parameter init (mimics PyTorch nn.Linear default U(-k, k),
# k = 1/sqrt(fan_in)).  W1..W5 stored transposed (in, out); W6 as (1, 32).
# ----------------------------------------------------------------------------
def init_params(key, input_size):
    dims = (input_size,) + HIDDEN_DIMS
    params = []
    for li in range(len(dims) - 1):
        fan_in, fan_out = dims[li], dims[li + 1]
        key, kw, kb = jax.random.split(key, 3)
        bound = 1.0 / jnp.sqrt(jnp.float32(fan_in))
        if li == len(dims) - 2:
            # last layer kept as a (1, 32) row for the VPU/XLU path
            w = jax.random.uniform(kw, (1, fan_in), jnp.float32,
                                   minval=-bound, maxval=bound)
            b = jax.random.uniform(kb, (1, 1), jnp.float32,
                                   minval=-bound, maxval=bound)
        else:
            w = jax.random.uniform(kw, (fan_in, fan_out), jnp.float32,
                                   minval=-bound, maxval=bound)
            b = jax.random.uniform(kb, (1, fan_out), jnp.float32,
                                   minval=-bound, maxval=bound)
        params.append((w, b))
    return params


# Pure-JAX reference (matches the PyTorch module semantics).
def reference_forward(x, params):
    h = x
    for i, (w, b) in enumerate(params):
        if i < len(params) - 1:
            h = jnp.maximum(h @ w + b, 0.0)
        else:
            h = h @ w.T + b          # last layer weight stored as (1, 32)
    return h


if __name__ == "__main__":
    key = jax.random.PRNGKey(0)
    key, kx = jax.random.split(key)

    input_size = 32   # stand-in for X_train.shape[1]
    batch = 256       # small demo; 2 MXU-aligned 128-row tiles -> exercises the grid

    x = jax.random.normal(kx, (batch, input_size), jnp.float32)
    params = init_params(key, input_size)

    out = regression_mlp_forward(x, params)
    out = jax.block_until_ready(out)

    ref = reference_forward(x, params)
    assert out.shape == (batch, 1)
    assert jnp.allclose(out, ref, atol=1e-3, rtol=1e-3), "mismatch vs reference"

    print("KERNEL_OK")
</pallas_src>

<mosaic_0001>
module attributes {stable_mosaic.version = 11 : i64} {
  func.func @mlp_kernel(%arg0: i32, %arg1: memref<128x32xf32, #tpu.memory_space<vmem>>, %arg2: memref<32x512xf32, #tpu.memory_space<vmem>>, %arg3: memref<1x512xf32, #tpu.memory_space<vmem>>, %arg4: memref<512x256xf32, #tpu.memory_space<vmem>>, %arg5: memref<1x256xf32, #tpu.memory_space<vmem>>, %arg6: memref<256x128xf32, #tpu.memory_space<vmem>>, %arg7: memref<1x128xf32, #tpu.memory_space<vmem>>, %arg8: memref<128x64xf32, #tpu.memory_space<vmem>>, %arg9: memref<1x64xf32, #tpu.memory_space<vmem>>, %arg10: memref<64x32xf32, #tpu.memory_space<vmem>>, %arg11: memref<1x32xf32, #tpu.memory_space<vmem>>, %arg12: memref<1x32xf32, #tpu.memory_space<vmem>>, %arg13: memref<1x1xf32, #tpu.memory_space<vmem>>, %arg14: memref<1x128xf32, #tpu.memory_space<vmem>>) attributes {dimension_semantics = [#tpu.dimension_semantics<parallel>], iteration_bounds = array<i64: 2>, scalar_prefetch = 0 : i64, scratch_operands = 0 : i64, tpu.core_type = #tpu.core_type<tc>, window_params = [{transform_indices = @transform_0, window_bounds = array<i64: 128, 32>}, {pipeline_mode = #tpu.pipeline_mode<synchronous>, transform_indices = @transform_1, window_bounds = array<i64: 32, 512>}, {pipeline_mode = #tpu.pipeline_mode<synchronous>, transform_indices = @transform_2, window_bounds = array<i64: 1, 512>}, {pipeline_mode = #tpu.pipeline_mode<synchronous>, transform_indices = @transform_3, window_bounds = array<i64: 512, 256>}, {pipeline_mode = #tpu.pipeline_mode<synchronous>, transform_indices = @transform_4, window_bounds = array<i64: 1, 256>}, {pipeline_mode = #tpu.pipeline_mode<synchronous>, transform_indices = @transform_5, window_bounds = array<i64: 256, 128>}, {pipeline_mode = #tpu.pipeline_mode<synchronous>, transform_indices = @transform_6, window_bounds = array<i64: 1, 128>}, {pipeline_mode = #tpu.pipeline_mode<synchronous>, transform_indices = @transform_7, window_bounds = array<i64: 128, 64>}, {pipeline_mode = #tpu.pipeline_mode<synchronous>, transform_indices = @transform_8, window_bounds = array<i64: 1, 64>}, {pipeline_mode = #tpu.pipeline_mode<synchronous>, transform_indices = @transform_9, window_bounds = array<i64: 64, 32>}, {pipeline_mode = #tpu.pipeline_mode<synchronous>, transform_indices = @transform_10, window_bounds = array<i64: 1, 32>}, {pipeline_mode = #tpu.pipeline_mode<synchronous>, transform_indices = @transform_11, window_bounds = array<i64: 1, 32>}, {pipeline_mode = #tpu.pipeline_mode<synchronous>, transform_indices = @transform_12, window_bounds = array<i64: 1, 1>}, {transform_indices = @transform_13, window_bounds = array<i64: 1, 128>}]} {
    %c0 = arith.constant 0 : index
    %c0_0 = arith.constant 0 : index
    %0 = vector.load %arg1[%c0, %c0_0] : memref<128x32xf32, #tpu.memory_space<vmem>>, vector<128x32xf32>
    %c0_1 = arith.constant 0 : index
    %c0_2 = arith.constant 0 : index
    %1 = vector.load %arg2[%c0_1, %c0_2] : memref<32x512xf32, #tpu.memory_space<vmem>>, vector<32x512xf32>
    %cst = arith.constant dense<0.000000e+00> : vector<128x512xf32>
    %2 = tpu.matmul %0, %1, %cst {dimension_numbers = #tpu.dot_dimension_numbers<[1], [0], [0], [1], [0, 0, 1, 1], [], []>} : vector<128x32xf32>, vector<32x512xf32>, vector<128x512xf32> -> vector<128x512xf32>
    %c0_3 = arith.constant 0 : index
    %c0_4 = arith.constant 0 : index
    %3 = vector.load %arg3[%c0_3, %c0_4] : memref<1x512xf32, #tpu.memory_space<vmem>>, vector<1x512xf32>
    %4 = vector.broadcast %3 : vector<1x512xf32> to vector<128x512xf32>
    %5 = arith.addf %2, %4 : vector<128x512xf32>
    %cst_5 = arith.constant 0.000000e+00 : f32
    %6 = vector.broadcast %cst_5 : f32 to vector<128x512xf32>
    %7 = arith.maximumf %5, %6 : vector<128x512xf32>
    %c0_6 = arith.constant 0 : index
    %c0_7 = arith.constant 0 : index
    %8 = vector.load %arg4[%c0_6, %c0_7] : memref<512x256xf32, #tpu.memory_space<vmem>>, vector<512x256xf32>
    %cst_8 = arith.constant dense<0.000000e+00> : vector<128x256xf32>
    %9 = tpu.matmul %7, %8, %cst_8 {dimension_numbers = #tpu.dot_dimension_numbers<[1], [0], [0], [1], [0, 0, 1, 1], [], []>} : vector<128x512xf32>, vector<512x256xf32>, vector<128x256xf32> -> vector<128x256xf32>
    %c0_9 = arith.constant 0 : index
    %c0_10 = arith.constant 0 : index
    %10 = vector.load %arg5[%c0_9, %c0_10] : memref<1x256xf32, #tpu.memory_space<vmem>>, vector<1x256xf32>
    %11 = vector.broadcast %10 : vector<1x256xf32> to vector<128x256xf32>
    %12 = arith.addf %9, %11 : vector<128x256xf32>
    %cst_11 = arith.constant 0.000000e+00 : f32
    %13 = vector.broadcast %cst_11 : f32 to vector<128x256xf32>
    %14 = arith.maximumf %12, %13 : vector<128x256xf32>
    %c0_12 = arith.constant 0 : index
    %c0_13 = arith.constant 0 : index
    %15 = vector.load %arg6[%c0_12, %c0_13] : memref<256x128xf32, #tpu.memory_space<vmem>>, vector<256x128xf32>
    %cst_14 = arith.constant dense<0.000000e+00> : vector<128x128xf32>
    %16 = tpu.matmul %14, %15, %cst_14 {dimension_numbers = #tpu.dot_dimension_numbers<[1], [0], [0], [1], [0, 0, 1, 1], [], []>} : vector<128x256xf32>, vector<256x128xf32>, vector<128x128xf32> -> vector<128x128xf32>
    %c0_15 = arith.constant 0 : index
    %c0_16 = arith.constant 0 : index
    %17 = vector.load %arg7[%c0_15, %c0_16] : memref<1x128xf32, #tpu.memory_space<vmem>>, vector<1x128xf32>
    %18 = vector.broadcast %17 : vector<1x128xf32> to vector<128x128xf32>
    %19 = arith.addf %16, %18 : vector<128x128xf32>
    %cst_17 = arith.constant 0.000000e+00 : f32
    %20 = vector.broadcast %cst_17 : f32 to vector<128x128xf32>
    %21 = arith.maximumf %19, %20 : vector<128x128xf32>
    %c0_18 = arith.constant 0 : index
    %c0_19 = arith.constant 0 : index
    %22 = vector.load %arg8[%c0_18, %c0_19] : memref<128x64xf32, #tpu.memory_space<vmem>>, vector<128x64xf32>
    %cst_20 = arith.constant dense<0.000000e+00> : vector<128x64xf32>
    %23 = tpu.matmul %21, %22, %cst_20 {dimension_numbers = #tpu.dot_dimension_numbers<[1], [0], [0], [1], [0, 0, 1, 1], [], []>} : vector<128x128xf32>, vector<128x64xf32>, vector<128x64xf32> -> vector<128x64xf32>
    %c0_21 = arith.constant 0 : index
    %c0_22 = arith.constant 0 : index
    %24 = vector.load %arg9[%c0_21, %c0_22] : memref<1x64xf32, #tpu.memory_space<vmem>>, vector<1x64xf32>
    %25 = vector.broadcast %24 : vector<1x64xf32> to vector<128x64xf32>
    %26 = arith.addf %23, %25 : vector<128x64xf32>
    %cst_23 = arith.constant 0.000000e+00 : f32
    %27 = vector.broadcast %cst_23 : f32 to vector<128x64xf32>
    %28 = arith.maximumf %26, %27 : vector<128x64xf32>
    %c0_24 = arith.constant 0 : index
    %c0_25 = arith.constant 0 : index
    %29 = vector.load %arg10[%c0_24, %c0_25] : memref<64x32xf32, #tpu.memory_space<vmem>>, vector<64x32xf32>
    %cst_26 = arith.constant dense<0.000000e+00> : vector<128x32xf32>
    %30 = tpu.matmul %28, %29, %cst_26 {dimension_numbers = #tpu.dot_dimension_numbers<[1], [0], [0], [1], [0, 0, 1, 1], [], []>} : vector<128x64xf32>, vector<64x32xf32>, vector<128x32xf32> -> vector<128x32xf32>
    %c0_27 = arith.constant 0 : index
    %c0_28 = arith.constant 0 : index
    %31 = vector.load %arg11[%c0_27, %c0_28] : memref<1x32xf32, #tpu.memory_space<vmem>>, vector<1x32xf32>
    %32 = vector.broadcast %31 : vector<1x32xf32> to vector<128x32xf32>
    %33 = arith.addf %30, %32 : vector<128x32xf32>
    %cst_29 = arith.constant 0.000000e+00 : f32
    %34 = vector.broadcast %cst_29 : f32 to vector<128x32xf32>
    %35 = arith.maximumf %33, %34 : vector<128x32xf32>
    %c0_30 = arith.constant 0 : index
    %c0_31 = arith.constant 0 : index
    %36 = vector.load %arg12[%c0_30, %c0_31] : memref<1x32xf32, #tpu.memory_space<vmem>>, vector<1x32xf32>
    %37 = vector.broadcast %36 : vector<1x32xf32> to vector<128x32xf32>
    %38 = arith.mulf %35, %37 : vector<128x32xf32>
    %cst_32 = arith.constant dense<0.000000e+00> : vector<128xf32>
    %39 = vector.multi_reduction <add>, %38, %cst_32 [1] : vector<128x32xf32> to vector<128xf32>
    %40 = vector.shape_cast %39 : vector<128xf32> to vector<1x128xf32>
    %c0_33 = arith.constant 0 : index
    %c0_34 = arith.constant 0 : index
    %41 = vector.load %arg13[%c0_33, %c0_34] : memref<1x1xf32, #tpu.memory_space<vmem>>, vector<1x1xf32>
    %42 = vector.broadcast %41 : vector<1x1xf32> to vector<1x128xf32>
    %43 = arith.addf %40, %42 : vector<1x128xf32>
    %c0_35 = arith.constant 0 : index
    %c0_36 = arith.constant 0 : index
    %44 = vector.load %arg14[%c0_35, %c0_36] : memref<1x128xf32, #tpu.memory_space<vmem>>, vector<1x128xf32>
    tpu.vector_store %arg14[%c0_35, %c0_36], %43 {strides = array<i32>} : memref<1x128xf32, #tpu.memory_space<vmem>>, vector<1x128xf32>,
    return
  }
  func.func @transform_0(%arg0: i32) -> (i32, i32) {
    %c0_i32 = arith.constant 0 : i32
    %c0_i32_0 = arith.constant 0 : i32
    return %arg0, %c0_i32 : i32, i32
  }
  func.func @transform_1(%arg0: i32) -> (i32, i32) {
    %c0_i32 = arith.constant 0 : i32
    %c0_i32_0 = arith.constant 0 : i32
    %c0_i32_1 = arith.constant 0 : i32
    return %c0_i32, %c0_i32_0 : i32, i32
  }
  func.func @transform_2(%arg0: i32) -> (i32, i32) {
    %c0_i32 = arith.constant 0 : i32
    %c0_i32_0 = arith.constant 0 : i32
    %c0_i32_1 = arith.constant 0 : i32
    return %c0_i32, %c0_i32_0 : i32, i32
  }
  func.func @transform_3(%arg0: i32) -> (i32, i32) {
    %c0_i32 = arith.constant 0 : i32
    %c0_i32_0 = arith.constant 0 : i32
    %c0_i32_1 = arith.constant 0 : i32
    return %c0_i32, %c0_i32_0 : i32, i32
  }
  func.func @transform_4(%arg0: i32) -> (i32, i32) {
    %c0_i32 = arith.constant 0 : i32
    %c0_i32_0 = arith.constant 0 : i32
    %c0_i32_1 = arith.constant 0 : i32
    return %c0_i32, %c0_i32_0 : i32, i32
  }
  func.func @transform_5(%arg0: i32) -> (i32, i32) {
    %c0_i32 = arith.constant 0 : i32
    %c0_i32_0 = arith.constant 0 : i32
    %c0_i32_1 = arith.constant 0 : i32
    return %c0_i32, %c0_i32_0 : i32, i32
  }
  func.func @transform_6(%arg0: i32) -> (i32, i32) {
    %c0_i32 = arith.constant 0 : i32
    %c0_i32_0 = arith.constant 0 : i32
    %c0_i32_1 = arith.constant 0 : i32
    return %c0_i32, %c0_i32_0 : i32, i32
  }
  func.func @transform_7(%arg0: i32) -> (i32, i32) {
    %c0_i32 = arith.constant 0 : i32
    %c0_i32_0 = arith.constant 0 : i32
    %c0_i32_1 = arith.constant 0 : i32
    return %c0_i32, %c0_i32_0 : i32, i32
  }
  func.func @transform_8(%arg0: i32) -> (i32, i32) {
    %c0_i32 = arith.constant 0 : i32
    %c0_i32_0 = arith.constant 0 : i32
    %c0_i32_1 = arith.constant 0 : i32
    return %c0_i32, %c0_i32_0 : i32, i32
  }
  func.func @transform_9(%arg0: i32) -> (i32, i32) {
    %c0_i32 = arith.constant 0 : i32
    %c0_i32_0 = arith.constant 0 : i32
    %c0_i32_1 = arith.constant 0 : i32
    return %c0_i32, %c0_i32_0 : i32, i32
  }
  func.func @transform_10(%arg0: i32) -> (i32, i32) {
    %c0_i32 = arith.constant 0 : i32
    %c0_i32_0 = arith.constant 0 : i32
    %c0_i32_1 = arith.constant 0 : i32
    return %c0_i32, %c0_i32_0 : i32, i32
  }
  func.func @transform_11(%arg0: i32) -> (i32, i32) {
    %c0_i32 = arith.constant 0 : i32
    %c0_i32_0 = arith.constant 0 : i32
    %c0_i32_1 = arith.constant 0 : i32
    return %c0_i32, %c0_i32_0 : i32, i32
  }
  func.func @transform_12(%arg0: i32) -> (i32, i32) {
    %c0_i32 = arith.constant 0 : i32
    %c0_i32_0 = arith.constant 0 : i32
    %c0_i32_1 = arith.constant 0 : i32
    return %c0_i32, %c0_i32_0 : i32, i32
  }
  func.func @transform_13(%arg0: i32) -> (i32, i32) {
    %c0_i32 = arith.constant 0 : i32
    %c0_i32_0 = arith.constant 0 : i32
    return %c0_i32, %arg0 : i32, i32
  }
}

</mosaic_0001>

<bundles_post_ra>
// kernel: tpu_custom_call.1
= control target key start
LH: loop header
LB: loop body
LE: loop exit
PB: predicated region body
PF: predicated region fallthrough
CT: control target
= control target key end

     0   :  { %s3801_s0 = inlined_call_operand.vmem [shape: f32[256,32], index: 0, kind: input, shape index: {}]   ;;  %s3802_s1 = inlined_call_operand.vmem [shape: f32[32,512], index: 1, kind: input, shape index: {}]   ;;  %s3803_s2 = inlined_call_operand.vmem [shape: f32[1,512], index: 2, kind: input, shape index: {}]   ;;  %s3804_s3 = inlined_call_operand.hbm [shape: f32[512,256], index: 3, kind: input, shape index: {}]   ;;  %s3805_s4 = inlined_call_operand.vmem [shape: f32[1,256], index: 4, kind: input, shape index: {}]   ;;  %s3806_s5 = inlined_call_operand.vmem [shape: f32[256,128], index: 5, kind: input, shape index: {}]   ;;  %s3807_s6 = inlined_call_operand.vmem [shape: f32[1,128], index: 6, kind: input, shape index: {}]   ;;  %s3808_s7 = inlined_call_operand.vmem [shape: f32[128,64], index: 7, kind: input, shape index: {}]   ;;  %s3809_s8 = inlined_call_operand.vmem [shape: f32[1,64], index: 8, kind: input, shape index: {}]   ;;  %s3810_s9 = inlined_call_operand.vmem [shape: f32[64,32], index: 9, kind: input, shape index: {}]   ;;  %s3811_s10 = inlined_call_operand.vmem [shape: f32[1,32], index: 10, kind: input, shape index: {}]   ;;  %s3812_s11 = inlined_call_operand.vmem [shape: f32[1,32], index: 11, kind: input, shape index: {}]   ;;  %s3813_s12 = inlined_call_operand.<no memory space> [shape: f32[1,1], index: 12, kind: input, shape index: {}]   ;;  %s3814_s13 = inlined_call_operand.hbm [shape: f32[1,256], index: 13, kind: output, shape index: {}]  }
   0x1   :  { %3892 = sst [smem:[#allocation23_spill]] %s3804_s3  ;;  %v18_v0 = vstv %s3813_s12 }
   0x2   :  { %19 = vst [vmem:[#allocation2] sm:$0x1] %v18_v0 }
   0x3   :  { %20 = vsyncpa [#allocation4], 0 }
   0x4   :  { %21 = vsyncpa [#allocation5], 0 }
   0x5   :  { %23 = vsyncpa [#allocation5 + $0x1], 0  ;;  %s2560_s27 = smov 0   ;;  %s2562_s28 = smov 0  }
   0x6   :  { %s2564_s29 = smov 0   ;;  %s2566_s30 = smov 0  }
   0x7 LB: > { %3893 = sst [smem:[#allocation9_spill]] %s2477_s29  ;;  %s2581_s12 = sadd.s32 4294967295, %s2481_s30   ;;  %s2481_s30 = sphi %s2566_s30, %s3990_s30   ;;  %s2477_s29 = sphi %s2564_s29, %s3987_s29   ;;  %s2473_s28 = sphi %s2562_s28, %s3989_s28   ;;  %s2469_s27 = sphi %s2560_s27, %s3988_s27  }
   0x8   : > { %s2237_s14 = sadd.s32 4294967294, %s2481_s30   ;;  %s2585_s15 = sadd.s32 1, %s2481_s30  }
   0x9   : > { %s314_s16 = sadd.s32 1, %s2477_s29  ;;  %s311_s17 = ssub.s32 %s2481_s30, %s2585_s15 }
   0xa   : > { %p324_p0 = scmp.ne.s32.totalorder %s2477_s29, %s2473_s28  ;;  %p312_p1 = scmp.eq.s32.totalorder %s311_s17, 0 }
   0xb   : > { %p325_p2 = scmp.eq.s32.totalorder %s2581_s12, 1  ;;  %p330_p3 = scmp.ne.s32.totalorder %s2473_s28, %s2469_s27 }
   0xc   : > { %p331_p4 = scmp.eq.s32.totalorder %s2237_s14, 1  ;;  %p2238_p7 = scmp.ge.s32.totalorder %s2481_s30, 1 }
   0xd   : > { %s2596_s18 = scalar_select %p312_p1, %s2477_s29, %s314_s16  }
   0xe   : > { %p2598_p5 = por %p325_p2, %p324_p0  ;;  %p2602_p6 = por %p331_p4, %p330_p3 }
   0xf   : > { %3894 = sst [smem:[#allocation10_spill]] %s2596_s18  ;;  %p338_p8 = scmp.lt.s32.totalorder %s2481_s30, 3 }
  0x10   : > { %p2341_p9 = scmp.eq.s32.totalorder %s2581_s12, 0  ;;  %s3897_s3 = sld [smem:[#allocation23_spill]] }
  0x11   : > { %p339_p10 = pnand %p2238_p7, %p338_p8  ;;  %s2483_s24 = smov [#allocation3]  }
  0x12   : > { %s357_s25 = sshll.u32 %s2483_s24, 4  ;;  %s2484_s26 = smov 256   ;;  %s358_s25 = int_to_ptr.vmem [resolvable:$true] %s357_s25 }
  0x13   : > { %p2333_p11 = pneg %p339_p10  ;;  %s2485_s14 = smov 16  }
  0x14   : > { %409 = sbr.rel (%p339_p10) target bundleno = 1087 (0x43f), region = 72 }
  0x15   : > { %p2334_p12 = pnand %p2341_p9, %p2333_p11 }
  0x16   : > { %s355_s23 = sshll.u32 %s3897_s3, 4  ;;  %s356_s23 = int_to_ptr.hbm [resolvable:$true] %s355_s23 }
  0x17   : > { %2336 = dma.hbm_to_vmem [thread:$0]  (!%p2334_p12), %s356_s23, 16384, %s358_s25, [#allocation4], %s2484_s26, %s2484_s26, %s2485_s14  }
  0x19   : > { %2460 = dma.done.wait (%p2341_p9), [#allocation4], 16384  }
  0x1a   : > { %2462 = vsyncadd (%p2341_p9), [#allocation4], 4294950912  ;;  %s2243_s16 = sshll.u32 %s2581_s12, 4  ;;  %v487_v1 = vld [vmem:[%s3802_s1 + $0x60] sm:$0xff]  ;;  %v488_v2 = vld [vmem:[%s3802_s1 + $0x68] sm:$0xff]  ;;  %vm501_vm0 = vcmask 261120   ;;  %s2166_s18 = scalar_lea.hbm %s3814_s13, %s2581_s12 }
  0x1b   : > { %p454_p13 = scmp.lt.s32.totalorder %s2243_s16, 31  ;;  %v489_v3 = vld [vmem:[%s3802_s1 + $0x70] sm:$0xff]  ;;  %562 = vmatpush.msra.mxu0 %v487_v1  ;;  %627 = vmatpush.msra.mxu1 %v488_v2  ;;  %v490_v4 = vld [vmem:[%s3802_s1 + $0x78] sm:$0xff]  ;;  %v483_v5 = vld [vmem:[%s3802_s1 + $0x40] sm:$0xff]  ;;  %vm1855_vm1 = vcmask 523264   ;;  %vm2097_vm2 = vcmask 130112  }
  0x1c   : > { %v484_v6 = vld [vmem:[%s3802_s1 + $0x48] sm:$0xff]  ;;  %692 = vmatpush.msra.mxu2 %v489_v3  ;;  %757 = vmatpush.msra.mxu3 %v490_v4  ;;  %v485_v7 = vld [vmem:[%s3802_s1 + $0x50] sm:$0xff]  ;;  %v486_v8 = vld [vmem:[%s3802_s1 + $0x58] sm:$0xff]  ;;  %vm2101_vm3 = vcmask 195712   ;;  %vm2105_vm4 = vcmask 261312   ;;  %vm2109_vm5 = vcmask 326912  }
  0x1d   : > { %s3992_s16 = smov (!%p454_p13, %s2243_s16), 31  ;;  %v479_v9 = vld [vmem:[%s3802_s1 + $0x20] sm:$0xff]  ;;  %563 = vmatpush.msra.mxu0 %v483_v5  ;;  %628 = vmatpush.msra.mxu1 %v484_v6  ;;  %v480_v10 = vld [vmem:[%s3802_s1 + $0x28] sm:$0xff]  ;;  %v481_v11 = vld [vmem:[%s3802_s1 + $0x30] sm:$0xff]  ;;  %vm2113_vm6 = vcmask 392512   ;;  %vm2117_vm7 = vcmask 458112  }
  0x1e   : > { %s2244_s26 = sshll.u32 %s3992_s16, 3  ;;  %v482_v12 = vld [vmem:[%s3802_s1 + $0x38] sm:$0xff]  ;;  %693 = vmatpush.msra.mxu2 %v485_v7  ;;  %758 = vmatpush.msra.mxu3 %v486_v8  ;;  %v475_v13 = vld [vmem:[%s3802_s1] sm:$0xff]  ;;  %v476_v14 = vld [vmem:[%s3802_s1 + $0x8] sm:$0xff]  ;;  %vm2121_vm8 = vcmask 523712   ;;  %vm2125_vm9 = vcmask 589312  }
  0x1f   : > { %s2658_s23 = scalar_lea.vmem %s3801_s0, %s2244_s26  ;;  %564 = vmatpush.msra.mxu0 %v479_v9  ;;  %629 = vmatpush.msra.mxu1 %v480_v10  ;;  %v477_v15 = vld [vmem:[%s3802_s1 + $0x10] sm:$0xff]  ;;  %v478_v16 = vld [vmem:[%s3802_s1 + $0x18] sm:$0xff]  ;;  %v966_v22 = vld [vmem:[#allocation3 + $0x2e0] sm:$0xff]  ;;  %vm2129_vm10 = vcmask 654912   ;;  %s451_s3 = sand.u32 1, %s2473_s28   ;;  %vm2133_vm11 = vcmask 720512  }
  0x20   : > { %694 = vmatpush.msra.mxu2 %v481_v11  ;;  %759 = vmatpush.msra.mxu3 %v482_v12  ;;  %v459_v17 = vld [vmem:[%s2658_s23] sm:$0xff]  ;;  %v968_v18 = vld [vmem:[#allocation3 + $0x2f0] sm:$0xff]  ;;  %v460_v30 = vld [vmem:[%s2658_s23 + $0x8] sm:$0xff]  ;;  %vm2137_vm12 = vcmask 786112   ;;  %vm2141_vm13 = vcmask 851712   ;;  %vm2145_vm14 = vcmask 917312  }
  0x21   : > { %565 = vmatpush.msra.mxu0 %v475_v13  ;;  %630 = vmatpush.msra.mxu1 %v476_v14  ;;  %v904_v19 = vld [vmem:[#allocation3 + $0xf0] sm:$0xff]  ;;  %v902_v23 = vld [vmem:[#allocation3 + $0xe0] sm:$0xff]  ;;  %vm2149_vm15 = vcmask 982912   ;;  %s452_s14 = scalar_lea.vmem [#allocation6], %s451_s3  ;;  %s2170_s12 = sshll.u32 %s2166_s18, 4  ;;  %s2171_s12 = int_to_ptr.hbm [resolvable:$true] %s2170_s12 }
  0x22   : > { %695 = vmatpush.msra.mxu2 %v477_v15  ;;  %760 = vmatpush.msra.mxu3 %v478_v16  ;;  %v1000_v20 = vld [vmem:[#allocation3 + $0x3f0] sm:$0xff]  ;;  %v998_v24 = vld [vmem:[#allocation3 + $0x3e0] sm:$0xff]  ;;  %s2168_s17 = sshll.u32 %s452_s14, 4  ;;  %s2158_s21 = scalar_lea.sflag [#allocation5], %s451_s3  ;;  %s2169_s17 = int_to_ptr.vmem [resolvable:$true] %s2168_s17 }
  0x23   : > { %2245 = vmatmul.msk.f32.vlgmr.msra.gmra.mxu0 %vm501_vm0, %v459_v17  ;;  %2261 = vmatmul.msk.f32.vlgmr.msra.gmra.mxu1 %vm501_vm0, %v459_v17  ;;  %v936_v21 = vld [vmem:[#allocation3 + $0x1f0] sm:$0xff]  ;;  %v934_v25 = vld [vmem:[#allocation3 + $0x1e0] sm:$0xff]  ;;  %s2429_s26 = sshra.s32 %s2171_s12, 4  ;;  %s2430_s26 = int_to_ptr.hbm [resolvable:$true] %s2429_s26 }
  0x24   : > { %2277 = vmatmul.msk.f32.vlgmr.msra.gmra.mxu2 %vm501_vm0, %v459_v17  ;;  %2293 = vmatmul.msk.f32.vlgmr.msra.gmra.mxu3 %vm501_vm0, %v459_v17  ;;  %v964_v26 = vld [vmem:[#allocation3 + $0x2d0] sm:$0xff]  ;;  %v962_v31 = vld [vmem:[#allocation3 + $0x2c0] sm:$0xff]  ;;  %s2431_s22 = scalar_lea.hbm %s2430_s26, 1  ;;  %p2436_p3 = scmp.lt.s32.totalorder %s2430_s26, %s3814_s13 }
  0x25   : > { %1138 = vmatpush.msrb.mxu2 %v968_v18  ;;  %1008 = vmatpush.msrb.mxu0 %v904_v19  ;;  %v900_v27 = vld [vmem:[#allocation3 + $0xd0] sm:$0xff]  ;;  %v898_v32 = vld [vmem:[#allocation3 + $0xc0] sm:$0xff]  ;;  %p2432_p0 = scmp.ne.s32.totalorder %s2430_s26, %s2431_s22 }
  0x26   : > { %1203 = vmatpush.msrb.mxu3 %v1000_v20  ;;  %1073 = vmatpush.msrb.mxu1 %v936_v21  ;;  %v996_v28 = vld [vmem:[#allocation3 + $0x3d0] sm:$0xff]  ;;  %v994_v33 = vld [vmem:[#allocation3 + $0x3c0] sm:$0xff] }
  0x27   : > { %v932_v29 = vld [vmem:[#allocation3 + $0x1d0] sm:$0xff]  ;;  %1139 = vmatpush.msrb.mxu2 %v966_v22  ;;  %1009 = vmatpush.msrb.mxu0 %v902_v23  ;;  %v930_v34 = vld [vmem:[#allocation3 + $0x1c0] sm:$0xff]  ;;  %p2433_p1 = pnand %p2432_p0, %p2598_p5 }
  0x28   : > { %1204 = vmatpush.msrb.mxu3 %v998_v24  ;;  %1074 = vmatpush.msrb.mxu1 %v934_v25  ;;  %v960_v35 = vld [vmem:[#allocation3 + $0x2b0] sm:$0xff]  ;;  %v958_v40 = vld [vmem:[#allocation3 + $0x2a0] sm:$0xff] }
  0x29   : > { %1140 = vmatpush.msrb.mxu2 %v964_v26  ;;  %1010 = vmatpush.msrb.mxu0 %v900_v27  ;;  %v896_v36 = vld [vmem:[#allocation3 + $0xb0] sm:$0xff]  ;;  %v894_v41 = vld [vmem:[#allocation3 + $0xa0] sm:$0xff]  ;;  %p2434_p2 = pneg %p2433_p1 }
  0x2a   : > { %1205 = vmatpush.msrb.mxu3 %v996_v28  ;;  %1075 = vmatpush.msrb.mxu1 %v932_v29  ;;  %v992_v37 = vld [vmem:[#allocation3 + $0x3b0] sm:$0xff]  ;;  %v990_v42 = vld [vmem:[#allocation3 + $0x3a0] sm:$0xff] }
  0x2b   : > { %2246 = vmatmul.msk.f32.gmra.mxu0 %vm501_vm0, %v460_v30  ;;  %2262 = vmatmul.msk.f32.gmra.mxu1 %vm501_vm0, %v460_v30  ;;  %v928_v38 = vld [vmem:[#allocation3 + $0x1b0] sm:$0xff]  ;;  %v926_v43 = vld [vmem:[#allocation3 + $0x1a0] sm:$0xff] }
  0x2c   : > { %2278 = vmatmul.msk.f32.gmra.mxu2 %vm501_vm0, %v460_v30  ;;  %2294 = vmatmul.msk.f32.gmra.mxu3 %vm501_vm0, %v460_v30  ;;  %v461_v39 = vld [vmem:[%s2658_s23 + $0x10] sm:$0xff]  ;;  %v462_v44 = vld [vmem:[%s2658_s23 + $0x18] sm:$0xff]  ;;  %v463_v49 = vld [vmem:[%s2658_s23 + $0x20] sm:$0xff] }
  0x2d   : > { %1141 = vmatpush.msrb.mxu2 %v962_v31  ;;  %1011 = vmatpush.msrb.mxu0 %v898_v32  ;;  %v956_v45 = vld [vmem:[#allocation3 + $0x290] sm:$0xff]  ;;  %v954_v50 = vld [vmem:[#allocation3 + $0x280] sm:$0xff]  ;;  %v969_v31 = vld [vmem:[#allocation3 + $0x2f8] sm:$0xff] }
  0x2e   : > { %1206 = vmatpush.msrb.mxu3 %v994_v33  ;;  %1076 = vmatpush.msrb.mxu1 %v930_v34  ;;  %v892_v46 = vld [vmem:[#allocation3 + $0x90] sm:$0xff]  ;;  %v890_v51 = vld [vmem:[#allocation3 + $0x80] sm:$0xff]  ;;  %v905_v32 = vld [vmem:[#allocation3 + $0xf8] sm:$0xff] }
  0x2f   : > { %1142 = vmatpush.msrb.mxu2 %v960_v35  ;;  %1012 = vmatpush.msrb.mxu0 %v896_v36  ;;  %v988_v47 = vld [vmem:[#allocation3 + $0x390] sm:$0xff]  ;;  %v986_v52 = vld [vmem:[#allocation3 + $0x380] sm:$0xff]  ;;  %v1001_v33 = vld [vmem:[#allocation3 + $0x3f8] sm:$0xff] }
  0x30   : > { %1207 = vmatpush.msrb.mxu3 %v992_v37  ;;  %1077 = vmatpush.msrb.mxu1 %v928_v38  ;;  %v924_v48 = vld [vmem:[#allocation3 + $0x190] sm:$0xff]  ;;  %v922_v53 = vld [vmem:[#allocation3 + $0x180] sm:$0xff]  ;;  %v937_v35 = vld [vmem:[#allocation3 + $0x1f8] sm:$0xff] }
  0x31   : > { %1143 = vmatpush.msrb.mxu2 %v958_v40  ;;  %1013 = vmatpush.msrb.mxu0 %v894_v41  ;;  %v464_v54 = vld [vmem:[%s2658_s23 + $0x28] sm:$0xff]  ;;  %v952_v55 = vld [vmem:[#allocation3 + $0x270] sm:$0xff]  ;;  %v467_v5 = vld [vmem:[%s2658_s23 + $0x40] sm:$0xff] }
  0x32   : > { %1208 = vmatpush.msrb.mxu3 %v990_v42  ;;  %1078 = vmatpush.msrb.mxu1 %v926_v43  ;;  %v888_v56 = vld [vmem:[#allocation3 + $0x70] sm:$0xff]  ;;  %v950_v60 = vld [vmem:[#allocation3 + $0x260] sm:$0xff]  ;;  %v967_v36 = vld [vmem:[#allocation3 + $0x2e8] sm:$0xff] }
  0x33   : > { %2247 = vmatmul.msk.f32.gmra.mxu0 %vm501_vm0, %v461_v39  ;;  %2263 = vmatmul.msk.f32.gmra.mxu1 %vm501_vm0, %v461_v39  ;;  %v984_v57 = vld [vmem:[#allocation3 + $0x370] sm:$0xff]  ;;  %v886_v61 = vld [vmem:[#allocation3 + $0x60] sm:$0xff]  ;;  %v903_v37 = vld [vmem:[#allocation3 + $0xe8] sm:$0xff] }
  0x34   : > { %2279 = vmatmul.msk.f32.gmra.mxu2 %vm501_vm0, %v461_v39  ;;  %2295 = vmatmul.msk.f32.gmra.mxu3 %vm501_vm0, %v461_v39  ;;  %v920_v58 = vld [vmem:[#allocation3 + $0x170] sm:$0xff]  ;;  %v982_v62 = vld [vmem:[#allocation3 + $0x360] sm:$0xff]  ;;  %v999_v38 = vld [vmem:[#allocation3 + $0x3e8] sm:$0xff] }
  0x35   : > { %1144 = vmatpush.msrb.mxu2 %v956_v45  ;;  %1014 = vmatpush.msrb.mxu0 %v892_v46  ;;  %v465_v59 = vld [vmem:[%s2658_s23 + $0x30] sm:$0xff]  ;;  %v918_v63 = vld [vmem:[#allocation3 + $0x160] sm:$0xff]  ;;  %v466_v0 = vld [vmem:[%s2658_s23 + $0x38] sm:$0xff] }
  0x36   : > { %1209 = vmatpush.msrb.mxu3 %v988_v47  ;;  %1079 = vmatpush.msrb.mxu1 %v924_v48  ;;  %v948_v1 = vld [vmem:[#allocation3 + $0x250] sm:$0xff]  ;;  %v946_v6 = vld [vmem:[#allocation3 + $0x240] sm:$0xff]  ;;  %v935_v40 = vld [vmem:[#allocation3 + $0x1e8] sm:$0xff] }
  0x37   : > { %1145 = vmatpush.msrb.mxu2 %v954_v50  ;;  %1015 = vmatpush.msrb.mxu0 %v890_v51  ;;  %v884_v2 = vld [vmem:[#allocation3 + $0x50] sm:$0xff]  ;;  %v882_v7 = vld [vmem:[#allocation3 + $0x40] sm:$0xff]  ;;  %v965_v42 = vld [vmem:[#allocation3 + $0x2d8] sm:$0xff] }
  0x38   : > { %1210 = vmatpush.msrb.mxu3 %v986_v52  ;;  %1080 = vmatpush.msrb.mxu1 %v922_v53  ;;  %v980_v3 = vld [vmem:[#allocation3 + $0x350] sm:$0xff]  ;;  %v978_v8 = vld [vmem:[#allocation3 + $0x340] sm:$0xff]  ;;  %v901_v45 = vld [vmem:[#allocation3 + $0xd8] sm:$0xff] }
  0x39   : > { %1146 = vmatpush.msrb.mxu2 %v952_v55  ;;  %1016 = vmatpush.msrb.mxu0 %v888_v56  ;;  %v916_v4 = vld [vmem:[#allocation3 + $0x150] sm:$0xff]  ;;  %v914_v9 = vld [vmem:[#allocation3 + $0x140] sm:$0xff]  ;;  %v997_v46 = vld [vmem:[#allocation3 + $0x3d8] sm:$0xff] }
  0x3a   : > { %1211 = vmatpush.msrb.mxu3 %v984_v57  ;;  %1081 = vmatpush.msrb.mxu1 %v920_v58  ;;  %v468_v10 = vld [vmem:[%s2658_s23 + $0x48] sm:$0xff]  ;;  %v944_v11 = vld [vmem:[#allocation3 + $0x230] sm:$0xff]  ;;  %v471_v25 = vld [vmem:[%s2658_s23 + $0x60] sm:$0xff] }
  0x3b   : > { %2248 = vmatmul.msk.f32.gmra.mxu0 %vm501_vm0, %v462_v44  ;;  %2264 = vmatmul.msk.f32.gmra.mxu1 %vm501_vm0, %v462_v44  ;;  %v880_v12 = vld [vmem:[#allocation3 + $0x30] sm:$0xff]  ;;  %v942_v16 = vld [vmem:[#allocation3 + $0x220] sm:$0xff]  ;;  %v963_v56 = vld [vmem:[#allocation3 + $0x2c8] sm:$0xff] }
  0x3c   : > { %2280 = vmatmul.msk.f32.gmra.mxu2 %vm501_vm0, %v462_v44  ;;  %2296 = vmatmul.msk.f32.gmra.mxu3 %vm501_vm0, %v462_v44  ;;  %v976_v13 = vld [vmem:[#allocation3 + $0x330] sm:$0xff]  ;;  %v878_v17 = vld [vmem:[#allocation3 + $0x20] sm:$0xff]  ;;  %v899_v57 = vld [vmem:[#allocation3 + $0xc8] sm:$0xff] }
  0x3d   : > { %1147 = vmatpush.msrb.mxu2 %v950_v60  ;;  %1017 = vmatpush.msrb.mxu0 %v886_v61  ;;  %v912_v14 = vld [vmem:[#allocation3 + $0x130] sm:$0xff]  ;;  %v974_v18 = vld [vmem:[#allocation3 + $0x320] sm:$0xff]  ;;  %v995_v58 = vld [vmem:[#allocation3 + $0x3c8] sm:$0xff] }
  0x3e   : > { %1212 = vmatpush.msrb.mxu3 %v982_v62  ;;  %1082 = vmatpush.msrb.mxu1 %v918_v63  ;;  %v469_v15 = vld [vmem:[%s2658_s23 + $0x50] sm:$0xff]  ;;  %v910_v19 = vld [vmem:[#allocation3 + $0x120] sm:$0xff]  ;;  %v470_v20 = vld [vmem:[%s2658_s23 + $0x58] sm:$0xff] }
  0x3f   : > { %1148 = vmatpush.msrb.mxu2 %v948_v1  ;;  %1018 = vmatpush.msrb.mxu0 %v884_v2  ;;  %v940_v21 = vld [vmem:[#allocation3 + $0x210] sm:$0xff]  ;;  %v938_v26 = vld [vmem:[#allocation3 + $0x200] sm:$0xff]  ;;  %v931_v1 = vld [vmem:[#allocation3 + $0x1c8] sm:$0xff] }
  0x40   : > { %1213 = vmatpush.msrb.mxu3 %v980_v3  ;;  %1083 = vmatpush.msrb.mxu1 %v916_v4  ;;  %v876_v22 = vld [vmem:[#allocation3 + $0x10] sm:$0xff]  ;;  %v874_v27 = vld [vmem:[#allocation3] sm:$0xff] }
  0x41   : > { %1149 = vmatpush.msrb.mxu2 %v946_v6  ;;  %1019 = vmatpush.msrb.mxu0 %v882_v7  ;;  %v972_v23 = vld [vmem:[#allocation3 + $0x310] sm:$0xff]  ;;  %v906_v28 = vld [vmem:[#allocation3 + $0x100] sm:$0xff] }
  0x42   : > { %1214 = vmatpush.msrb.mxu3 %v978_v8  ;;  %1084 = vmatpush.msrb.mxu1 %v914_v9  ;;  %v908_v24 = vld [vmem:[#allocation3 + $0x110] sm:$0xff]  ;;  %v970_v29 = vld [vmem:[#allocation3 + $0x300] sm:$0xff]  ;;  %v961_v8 = vld [vmem:[#allocation3 + $0x2b8] sm:$0xff] }
  0x43   : > { %2249 = vmatmul.msk.f32.gmra.mxu0 %vm501_vm0, %v463_v49  ;;  %2265 = vmatmul.msk.f32.gmra.mxu1 %vm501_vm0, %v463_v49  ;;  %v472_v30 = vld [vmem:[%s2658_s23 + $0x68] sm:$0xff]  ;;  %v473_v34 = vld [vmem:[%s2658_s23 + $0x70] sm:$0xff]  ;;  %v474_v39 = vld [vmem:[%s2658_s23 + $0x78] sm:$0xff]  ;;  %s2435_s23 = scalar_lea.hbm %s3814_s13, 2 }
  0x44   : > { %2281 = vmatmul.msk.f32.gmra.mxu2 %vm501_vm0, %v463_v49  ;;  %2297 = vmatmul.msk.f32.gmra.mxu3 %vm501_vm0, %v463_v49  ;;  %v491_v41 = vld [vmem:[%s3803_s2] sm:$0xf]  ;;  %p2437_p4 = scmp.lt.s32.totalorder %s2435_s23, %s2431_s22 }
  0x45   : > { %1150 = vmatpush.msrb.mxu2 %v944_v11  ;;  %1020 = vmatpush.msrb.mxu0 %v880_v12  ;;  %v2755_v43 = vperm.slane %v491_v41, 0  ;;  %v2757_v44 = vperm.slane %v491_v41, 1  ;;  %v933_v49 = vld [vmem:[#allocation3 + $0x1d8] sm:$0xff]  ;;  %v2769_v55 = vperm.slane %v491_v41, 3 }
  0x46   : > { %1215 = vmatpush.msrb.mxu3 %v976_v13  ;;  %1085 = vmatpush.msrb.mxu1 %v912_v14  ;;  %v897_v9 = vld [vmem:[#allocation3 + $0xb8] sm:$0xff]  ;;  %p2438_p7 = por %p2437_p4, %p2436_p3 }
  0x47   : > { %1151 = vmatpush.msrb.mxu2 %v942_v16  ;;  %1021 = vmatpush.msrb.mxu0 %v878_v17  ;;  %v929_v17 = vld [vmem:[#allocation3 + $0x1b8] sm:$0xff] }
  0x48   : > { %1216 = vmatpush.msrb.mxu3 %v974_v18  ;;  %1086 = vmatpush.msrb.mxu1 %v910_v19  ;;  %p2439_p8 = pnand %p2438_p7, %p2434_p2 }
  0x49   : > { %1152 = vmatpush.msrb.mxu2 %v940_v21  ;;  %1022 = vmatpush.msrb.mxu0 %v876_v22 }
  0x4a   : > { %1217 = vmatpush.msrb.mxu3 %v972_v23  ;;  %1087 = vmatpush.msrb.mxu1 %v908_v24  ;;  %v959_v24 = vld [vmem:[#allocation3 + $0x2a8] sm:$0xff] }
  0x4b   : > { %2250 = vmatmul.msk.f32.gmra.mxu0 %vm501_vm0, %v464_v54  ;;  %2266 = vmatmul.msk.f32.gmra.mxu1 %vm501_vm0, %v464_v54 }
  0x4c   : > { %2282 = vmatmul.msk.f32.gmra.mxu2 %vm501_vm0, %v464_v54  ;;  %2298 = vmatmul.msk.f32.gmra.mxu3 %vm501_vm0, %v464_v54  ;;  %v2767_v54 = vperm.slane %v491_v41, 2  ;;  %v893_v41 = vld [vmem:[#allocation3 + $0x98] sm:$0xff] }
  0x4d   : > { %1153 = vmatpush.msrb.mxu2 %v938_v26  ;;  %1023 = vmatpush.msrb.mxu0 %v874_v27  ;;  %v991_v26 = vld [vmem:[#allocation3 + $0x3a8] sm:$0xff] }
  0x4e   : > { %1088 = vmatpush.msrb.mxu1 %v906_v28  ;;  %1218 = vmatpush.msrb.mxu3 %v970_v29 }
  0x4f   : > { %1398 = vmatpush.msra.mxu2 %v969_v31  ;;  %1268 = vmatpush.msra.mxu0 %v905_v32 }
  0x50   : > { %1463 = vmatpush.msra.mxu3 %v1001_v33  ;;  %1333 = vmatpush.msra.mxu1 %v937_v35  ;;  %v927_v33 = vld [vmem:[#allocation3 + $0x1a8] sm:$0xff] }
  0x51   : > { %1399 = vmatpush.msra.mxu2 %v967_v36  ;;  %1269 = vmatpush.msra.mxu0 %v903_v37 }
  0x52   : > { %1464 = vmatpush.msra.mxu3 %v999_v38  ;;  %1334 = vmatpush.msra.mxu1 %v935_v40  ;;  %v957_v40 = vld [vmem:[#allocation3 + $0x298] sm:$0xff] }
  0x53   : > { %2251 = vmatmul.msk.f32.gmra.mxu0 %vm501_vm0, %v465_v59  ;;  %2267 = vmatmul.msk.f32.gmra.mxu1 %vm501_vm0, %v465_v59 }
  0x54   : > { %2283 = vmatmul.msk.f32.gmra.mxu2 %vm501_vm0, %v465_v59  ;;  %2299 = vmatmul.msk.f32.gmra.mxu3 %vm501_vm0, %v465_v59 }
  0x55   : > { %1400 = vmatpush.msra.mxu2 %v965_v42  ;;  %1270 = vmatpush.msra.mxu0 %v901_v45  ;;  %v989_v42 = vld [vmem:[#allocation3 + $0x398] sm:$0xff] }
  0x56   : > { %1465 = vmatpush.msra.mxu3 %v997_v46  ;;  %1335 = vmatpush.msra.mxu1 %v933_v49 }
  0x57   : > { %1401 = vmatpush.msra.mxu2 %v963_v56  ;;  %1271 = vmatpush.msra.mxu0 %v899_v57  ;;  %v925_v57 = vld [vmem:[#allocation3 + $0x198] sm:$0xff] }
  0x58   : > { %1466 = vmatpush.msra.mxu3 %v995_v58  ;;  %1336 = vmatpush.msra.mxu1 %v931_v1 }
  0x59   : > { %1402 = vmatpush.msra.mxu2 %v961_v8  ;;  %1272 = vmatpush.msra.mxu0 %v897_v9  ;;  %v955_v8 = vld [vmem:[#allocation3 + $0x288] sm:$0xff] }
  0x5a   : > { %1337 = vmatpush.msra.mxu1 %v929_v17  ;;  %v891_v9 = vld [vmem:[#allocation3 + $0x88] sm:$0xff] }
  0x5b   : > { %2252 = vmatmul.msk.f32.gmra.mxu0 %vm501_vm0, %v466_v0  ;;  %2268 = vmatmul.msk.f32.gmra.mxu1 %vm501_vm0, %v466_v0 }
  0x5c   : > { %2284 = vmatmul.msk.f32.gmra.mxu2 %vm501_vm0, %v466_v0  ;;  %2300 = vmatmul.msk.f32.gmra.mxu3 %vm501_vm0, %v466_v0 }
  0x5d   : > { %1403 = vmatpush.msra.mxu2 %v959_v24  ;;  %1338 = vmatpush.msra.mxu1 %v927_v33 }
  0x5f   : > { %1404 = vmatpush.msra.mxu2 %v957_v40  ;;  %1339 = vmatpush.msra.mxu1 %v925_v57  ;;  %v953_v40 = vld [vmem:[#allocation3 + $0x278] sm:$0xff] }
  0x61   : > { %1405 = vmatpush.msra.mxu2 %v955_v8 }
  0x63   : > { %2253 = vmatmul.msk.f32.gmra.mxu0 %vm501_vm0, %v467_v5  ;;  %2269 = vmatmul.msk.f32.gmra.mxu1 %vm501_vm0, %v467_v5 }
  0x64   : > { %2285 = vmatmul.msk.f32.gmra.mxu2 %vm501_vm0, %v467_v5  ;;  %2301 = vmatmul.msk.f32.gmra.mxu3 %vm501_vm0, %v467_v5 }
  0x65   : > { %1406 = vmatpush.msra.mxu2 %v953_v40  ;;  %v951_v40 = vld [vmem:[#allocation3 + $0x268] sm:$0xff] }
  0x67   : > { %1407 = vmatpush.msra.mxu2 %v951_v40 }
  0x6b   : > { %2254 = vmatmul.msk.f32.gmra.mxu0 %vm501_vm0, %v468_v10  ;;  %2270 = vmatmul.msk.f32.gmra.mxu1 %vm501_vm0, %v468_v10 }
  0x6c   : > { %2286 = vmatmul.msk.f32.gmra.mxu2 %vm501_vm0, %v468_v10  ;;  %2302 = vmatmul.msk.f32.gmra.mxu3 %vm501_vm0, %v468_v10  ;;  %v993_v10 = vld [vmem:[#allocation3 + $0x3b8] sm:$0xff] }
  0x6d   : > { %1467 = vmatpush.msra.mxu3 %v993_v10  ;;  %v987_v10 = vld [vmem:[#allocation3 + $0x388] sm:$0xff] }
  0x6f   : > { %1468 = vmatpush.msra.mxu3 %v991_v26 }
  0x71   : > { %1469 = vmatpush.msra.mxu3 %v989_v42  ;;  %v985_v42 = vld [vmem:[#allocation3 + $0x378] sm:$0xff] }
  0x73   : > { %2255 = vmatmul.msk.f32.gmra.mxu0 %vm501_vm0, %v469_v15  ;;  %2271 = vmatmul.msk.f32.gmra.mxu1 %vm501_vm0, %v469_v15 }
  0x74   : > { %2287 = vmatmul.msk.f32.gmra.mxu2 %vm501_vm0, %v469_v15  ;;  %2303 = vmatmul.msk.f32.gmra.mxu3 %vm501_vm0, %v469_v15 }
  0x75   : > { %1470 = vmatpush.msra.mxu3 %v987_v10 }
  0x77   : > { %1471 = vmatpush.msra.mxu3 %v985_v42  ;;  %v983_v42 = vld [vmem:[#allocation3 + $0x368] sm:$0xff] }
  0x79   : > { %1472 = vmatpush.msra.mxu3 %v983_v42 }
  0x7b   : > { %2256 = vmatmul.msk.f32.gmra.mxu0 %vm501_vm0, %v470_v20  ;;  %2272 = vmatmul.msk.f32.gmra.mxu1 %vm501_vm0, %v470_v20 }
  0x7c   : > { %2288 = vmatmul.msk.f32.gmra.mxu2 %vm501_vm0, %v470_v20  ;;  %2304 = vmatmul.msk.f32.gmra.mxu3 %vm501_vm0, %v470_v20 }
  0x83   : > { %2257 = vmatmul.msk.f32.gmra.mxu0 %vm501_vm0, %v471_v25  ;;  %2273 = vmatmul.msk.f32.gmra.mxu1 %vm501_vm0, %v471_v25 }
  0x84   : > { %2289 = vmatmul.msk.f32.gmra.mxu2 %vm501_vm0, %v471_v25  ;;  %2305 = vmatmul.msk.f32.gmra.mxu3 %vm501_vm0, %v471_v25  ;;  %v895_v25 = vld [vmem:[#allocation3 + $0xa8] sm:$0xff] }
  0x85   : > { %1273 = vmatpush.msra.mxu0 %v895_v25 }
  0x87   : > { %1274 = vmatpush.msra.mxu0 %v893_v41  ;;  %v889_v41 = vld [vmem:[#allocation3 + $0x78] sm:$0xff] }
  0x89   : > { %1275 = vmatpush.msra.mxu0 %v891_v9 }
  0x8b   : > { %2258 = vmatmul.msk.f32.gmra.mxu0 %vm501_vm0, %v472_v30  ;;  %2274 = vmatmul.msk.f32.gmra.mxu1 %vm501_vm0, %v472_v30 }
  0x8c   : > { %2290 = vmatmul.msk.f32.gmra.mxu2 %vm501_vm0, %v472_v30  ;;  %2306 = vmatmul.msk.f32.gmra.mxu3 %vm501_vm0, %v472_v30 }
  0x8d   : > { %1276 = vmatpush.msra.mxu0 %v889_v41  ;;  %v887_v41 = vld [vmem:[#allocation3 + $0x68] sm:$0xff] }
  0x8f   : > { %1277 = vmatpush.msra.mxu0 %v887_v41 }
  0x93   : > { %2259 = vmatmul.msk.f32.gmra.mxu0 %vm501_vm0, %v473_v34  ;;  %2275 = vmatmul.msk.f32.gmra.mxu1 %vm501_vm0, %v473_v34 }
  0x94   : > { %2291 = vmatmul.msk.f32.gmra.mxu2 %vm501_vm0, %v473_v34  ;;  %2307 = vmatmul.msk.f32.gmra.mxu3 %vm501_vm0, %v473_v34 }
  0x9b   : > { %2260 = vmatmul.msk.f32.gmra.mxu0 %vm501_vm0, %v474_v39  ;;  %2276 = vmatmul.msk.f32.gmra.mxu1 %vm501_vm0, %v474_v39 }
  0x9c   : > { %2292 = vmatmul.msk.f32.gmra.mxu2 %vm501_vm0, %v474_v39  ;;  %2308 = vmatmul.msk.f32.gmra.mxu3 %vm501_vm0, %v474_v39 }
  0xa0   : > { %v567_v47 = vpop.f32.mrf.mxu0  ;;  %v632_v48 = vpop.f32.mrf.mxu1 }
  0xa1   : > { %v2760_v50 = vadd.f32 %v567_v47, %v2755_v43  ;;  %v2763_v51 = vadd.f32 %v632_v48, %v2757_v44 }
  0xa3   : > { %v3861_v52 = vmax.f32 %v2760_v50, 0.0  ;;  %v3860_v53 = vmax.f32 %v2763_v51, 0.0 }
  0xa5   : > { %1024 = vmatmul.f32.vlgmr.msrb.gmra.mxu0 %v3861_v52  ;;  %1089 = vmatmul.f32.vlgmr.msrb.gmra.mxu1 %v3860_v53  ;;  %v971_v53 = vld [vmem:[#allocation3 + $0x308] sm:$0xff] }
  0xa7   : > { %v697_v59 = vpop.f32.mrf.mxu2  ;;  %v762_v60 = vpop.f32.mrf.mxu3 }
  0xa8   : > { %v2776_v61 = vadd.f32 %v697_v59, %v2767_v54  ;;  %v2779_v62 = vadd.f32 %v762_v60, %v2769_v55  ;;  %v570_v63 = vpop.f32.mrf.mxu0  ;;  %v635_v0 = vpop.f32.mrf.mxu1 }
  0xa9   : > { %v2782_v2 = vadd.f32 %v570_v63, %v2755_v43  ;;  %v2785_v3 = vadd.f32 %v635_v0, %v2757_v44 }
  0xaa   : > { %v3859_v4 = vmax.f32 %v2776_v61, 0.0  ;;  %v3856_v5 = vmax.f32 %v2779_v62, 0.0 }
  0xab   : > { %v3853_v6 = vmax.f32 %v2782_v2, 0.0  ;;  %v3852_v7 = vmax.f32 %v2785_v3, 0.0 }
  0xac   : > { %1154 = vmatmul.f32.vlgmr.msrb.gmra.mxu2 %v3859_v4  ;;  %1219 = vmatmul.f32.vlgmr.msrb.gmra.mxu3 %v3856_v5  ;;  %v909_v4 = vld [vmem:[#allocation3 + $0x118] sm:$0xff] }
  0xad   : > { %1027 = vmatmul.f32.gmra.mxu0 %v3853_v6  ;;  %1092 = vmatmul.f32.gmra.mxu1 %v3852_v7 }
  0xaf   : > { %v700_v11 = vpop.f32.mrf.mxu2  ;;  %v765_v12 = vpop.f32.mrf.mxu3 }
  0xb0   : > { %v2800_v13 = vadd.f32 %v700_v11, %v2767_v54  ;;  %v2803_v14 = vadd.f32 %v765_v12, %v2769_v55  ;;  %v573_v15 = vpop.f32.mrf.mxu0  ;;  %v638_v16 = vpop.f32.mrf.mxu1 }
  0xb1   : > { %v2806_v18 = vadd.f32 %v573_v15, %v2755_v43  ;;  %v2809_v19 = vadd.f32 %v638_v16, %v2757_v44 }
  0xb2   : > { %v3851_v20 = vmax.f32 %v2800_v13, 0.0  ;;  %v3848_v21 = vmax.f32 %v2803_v14, 0.0 }
  0xb3   : > { %v3845_v22 = vmax.f32 %v2806_v18, 0.0  ;;  %v3844_v23 = vmax.f32 %v2809_v19, 0.0 }
  0xb4   : > { %1157 = vmatmul.f32.gmra.mxu2 %v3851_v20  ;;  %1222 = vmatmul.f32.gmra.mxu3 %v3848_v21  ;;  %v911_v20 = vld [vmem:[#allocation3 + $0x128] sm:$0xff] }
  0xb5   : > { %1030 = vmatmul.f32.gmra.mxu0 %v3845_v22  ;;  %1095 = vmatmul.f32.gmra.mxu1 %v3844_v23 }
  0xb7   : > { %v703_v27 = vpop.f32.mrf.mxu2  ;;  %v768_v28 = vpop.f32.mrf.mxu3 }
  0xb8   : > { %v2824_v29 = vadd.f32 %v703_v27, %v2767_v54  ;;  %v2827_v30 = vadd.f32 %v768_v28, %v2769_v55  ;;  %v576_v31 = vpop.f32.mrf.mxu0  ;;  %v641_v32 = vpop.f32.mrf.mxu1 }
  0xb9   : > { %v2830_v34 = vadd.f32 %v576_v31, %v2755_v43  ;;  %v2833_v35 = vadd.f32 %v641_v32, %v2757_v44  ;;  %v923_v31 = vld [vmem:[#allocation3 + $0x188] sm:$0xff] }
  0xba   : > { %v3843_v36 = vmax.f32 %v2824_v29, 0.0  ;;  %v3840_v37 = vmax.f32 %v2827_v30, 0.0  ;;  %1340 = vmatpush.msra.mxu1 %v923_v31 }
  0xbb   : > { %v3837_v38 = vmax.f32 %v2830_v34, 0.0  ;;  %v3836_v39 = vmax.f32 %v2833_v35, 0.0 }
  0xbc   : > { %1160 = vmatmul.f32.gmra.mxu2 %v3843_v36  ;;  %1225 = vmatmul.f32.gmra.mxu3 %v3840_v37  ;;  %v913_v36 = vld [vmem:[#allocation3 + $0x138] sm:$0xff] }
  0xbd   : > { %1033 = vmatmul.f32.gmra.mxu0 %v3837_v38  ;;  %1098 = vmatmul.f32.gmra.mxu1 %v3836_v39 }
  0xbf   : > { %v706_v45 = vpop.f32.mrf.mxu2  ;;  %v771_v46 = vpop.f32.mrf.mxu3 }
  0xc0   : > { %v2848_v47 = vadd.f32 %v706_v45, %v2767_v54  ;;  %v2851_v48 = vadd.f32 %v771_v46, %v2769_v55  ;;  %v579_v49 = vpop.f32.mrf.mxu0  ;;  %v644_v56 = vpop.f32.mrf.mxu1 }
  0xc1   : > { %v2854_v58 = vadd.f32 %v579_v49, %v2755_v43  ;;  %v2857_v59 = vadd.f32 %v644_v56, %v2757_v44 }
  0xc2   : > { %v3835_v60 = vmax.f32 %v2848_v47, 0.0  ;;  %v3832_v63 = vmax.f32 %v2851_v48, 0.0 }
  0xc3   : > { %v3829_v0 = vmax.f32 %v2854_v58, 0.0  ;;  %v3828_v1 = vmax.f32 %v2857_v59, 0.0 }
  0xc4   : > { %1163 = vmatmul.f32.gmra.mxu2 %v3835_v60  ;;  %1228 = vmatmul.f32.gmra.mxu3 %v3832_v63  ;;  %v915_v60 = vld [vmem:[#allocation3 + $0x148] sm:$0xff] }
  0xc5   : > { %1036 = vmatmul.f32.gmra.mxu0 %v3829_v0  ;;  %1101 = vmatmul.f32.gmra.mxu1 %v3828_v1 }
  0xc7   : > { %v709_v11 = vpop.f32.mrf.mxu2  ;;  %v774_v12 = vpop.f32.mrf.mxu3 }
  0xc8   : > { %v2872_v15 = vadd.f32 %v709_v11, %v2767_v54  ;;  %v2875_v16 = vadd.f32 %v774_v12, %v2769_v55  ;;  %v582_v17 = vpop.f32.mrf.mxu0  ;;  %v647_v24 = vpop.f32.mrf.mxu1 }
  0xc9   : > { %v2878_v25 = vadd.f32 %v582_v17, %v2755_v43  ;;  %v2881_v26 = vadd.f32 %v647_v24, %v2757_v44  ;;  %v921_v17 = vld [vmem:[#allocation3 + $0x178] sm:$0xff] }
  0xca   : > { %v3827_v27 = vmax.f32 %v2872_v15, 0.0  ;;  %v3824_v28 = vmax.f32 %v2875_v16, 0.0  ;;  %1341 = vmatpush.msra.mxu1 %v921_v17 }
  0xcb   : > { %v3821_v32 = vmax.f32 %v2878_v25, 0.0  ;;  %v3820_v33 = vmax.f32 %v2881_v26, 0.0 }
  0xcc   : > { %1166 = vmatmul.f32.gmra.mxu2 %v3827_v27  ;;  %1231 = vmatmul.f32.gmra.mxu3 %v3824_v28  ;;  %v917_v27 = vld [vmem:[#allocation3 + $0x158] sm:$0xff] }
  0xcd   : > { %1039 = vmatmul.f32.gmra.mxu0 %v3821_v32  ;;  %1104 = vmatmul.f32.gmra.mxu1 %v3820_v33 }
  0xcf   : > { %v712_v45 = vpop.f32.mrf.mxu2  ;;  %v777_v46 = vpop.f32.mrf.mxu3 }
  0xd0   : > { %v2896_v49 = vadd.f32 %v712_v45, %v2767_v54  ;;  %v2899_v56 = vadd.f32 %v777_v46, %v2769_v55  ;;  %v585_v57 = vpop.f32.mrf.mxu0  ;;  %v650_v8 = vpop.f32.mrf.mxu1 }
  0xd1   : > { %v2902_v9 = vadd.f32 %v585_v57, %v2755_v43  ;;  %v2905_v10 = vadd.f32 %v650_v8, %v2757_v44 }
  0xd2   : > { %v3819_v11 = vmax.f32 %v2896_v49, 0.0  ;;  %v3816_v12 = vmax.f32 %v2899_v56, 0.0 }
  0xd3   : > { %v3817_v24 = vmax.f32 %v2902_v9, 0.0  ;;  %v3818_v31 = vmax.f32 %v2905_v10, 0.0 }
  0xd4   : > { %1169 = vmatmul.f32.gmra.mxu2 %v3819_v11  ;;  %1234 = vmatmul.f32.gmra.mxu3 %v3816_v12  ;;  %v919_v11 = vld [vmem:[#allocation3 + $0x168] sm:$0xff] }
  0xd5   : > { %1042 = vmatmul.f32.gmra.mxu0 %v3817_v24  ;;  %1107 = vmatmul.f32.gmra.mxu1 %v3818_v31 }
  0xd6   : > { %1342 = vmatpush.msra.mxu1 %v919_v11 }
  0xd7   : > { %v715_v45 = vpop.f32.mrf.mxu2  ;;  %v780_v46 = vpop.f32.mrf.mxu3 }
  0xd8   : > { %v2920_v57 = vadd.f32 %v715_v45, %v2767_v54  ;;  %v2923_v8 = vadd.f32 %v780_v46, %v2769_v55  ;;  %v588_v17 = vpop.f32.mrf.mxu0  ;;  %v653_v12 = vpop.f32.mrf.mxu1  ;;  %v949_v46 = vld [vmem:[#allocation3 + $0x258] sm:$0xff]  ;;  %1343 = vmatpush.msra.mxu1 %v917_v27 }
  0xd9   : > { %v2926_v24 = vadd.f32 %v588_v17, %v2755_v43  ;;  %v2929_v31 = vadd.f32 %v653_v12, %v2757_v44  ;;  %v885_v12 = vld [vmem:[#allocation3 + $0x58] sm:$0xff]  ;;  %1408 = vmatpush.msra.mxu2 %v949_v46 }
  0xda   : > { %v3822_v40 = vmax.f32 %v2920_v57, 0.0  ;;  %v3823_v41 = vmax.f32 %v2923_v8, 0.0  ;;  %v981_v17 = vld [vmem:[#allocation3 + $0x358] sm:$0xff]  ;;  %1278 = vmatpush.msra.mxu0 %v885_v12  ;;  %1344 = vmatpush.msra.mxu1 %v915_v60 }
  0xdb   : > { %v3825_v42 = vmax.f32 %v2926_v24, 0.0  ;;  %v3826_v45 = vmax.f32 %v2929_v31, 0.0  ;;  %1473 = vmatpush.msra.mxu3 %v981_v17 }
  0xdc   : > { %1172 = vmatmul.f32.gmra.mxu2 %v3822_v40  ;;  %1237 = vmatmul.f32.gmra.mxu3 %v3823_v41 }
  0xdd   : > { %1045 = vmatmul.f32.gmra.mxu0 %v3825_v42  ;;  %1110 = vmatmul.f32.gmra.mxu1 %v3826_v45 }
  0xde   : > { %1345 = vmatpush.msra.mxu1 %v913_v36 }
  0xdf   : > { %v718_v33 = vpop.f32.mrf.mxu2  ;;  %v783_v32 = vpop.f32.mrf.mxu3 }
  0xe0   : > { %v2944_v11 = vadd.f32 %v718_v33, %v2767_v54  ;;  %v2947_v40 = vadd.f32 %v783_v32, %v2769_v55  ;;  %v591_v41 = vpop.f32.mrf.mxu0  ;;  %v656_v28 = vpop.f32.mrf.mxu1  ;;  %v947_v32 = vld [vmem:[#allocation3 + $0x248] sm:$0xff]  ;;  %1346 = vmatpush.msra.mxu1 %v911_v20 }
  0xe1   : > { %v2950_v42 = vadd.f32 %v591_v41, %v2755_v43  ;;  %v2953_v45 = vadd.f32 %v656_v28, %v2757_v44  ;;  %v883_v28 = vld [vmem:[#allocation3 + $0x48] sm:$0xff]  ;;  %1409 = vmatpush.msra.mxu2 %v947_v32 }
  0xe2   : > { %v3830_v46 = vmax.f32 %v2944_v11, 0.0  ;;  %v3831_v12 = vmax.f32 %v2947_v40, 0.0  ;;  %v979_v41 = vld [vmem:[#allocation3 + $0x348] sm:$0xff]  ;;  %1279 = vmatpush.msra.mxu0 %v883_v28  ;;  %1347 = vmatpush.msra.mxu1 %v909_v4 }
  0xe3   : > { %v3833_v17 = vmax.f32 %v2950_v42, 0.0  ;;  %v3834_v33 = vmax.f32 %v2953_v45, 0.0  ;;  %1474 = vmatpush.msra.mxu3 %v979_v41 }
  0xe4   : > { %1175 = vmatmul.f32.gmra.mxu2 %v3830_v46  ;;  %1240 = vmatmul.f32.gmra.mxu3 %v3831_v12 }
  0xe5   : > { %1048 = vmatmul.f32.gmra.mxu0 %v3833_v17  ;;  %1113 = vmatmul.f32.gmra.mxu1 %v3834_v33 }
  0xe7   : > { %v721_v1 = vpop.f32.mrf.mxu2  ;;  %v786_v0 = vpop.f32.mrf.mxu3 }
  0xe8   : > { %v2968_v27 = vadd.f32 %v721_v1, %v2767_v54  ;;  %v2971_v46 = vadd.f32 %v786_v0, %v2769_v55  ;;  %v594_v12 = vpop.f32.mrf.mxu0  ;;  %v659_v63 = vpop.f32.mrf.mxu1  ;;  %v945_v0 = vld [vmem:[#allocation3 + $0x238] sm:$0xff] }
  0xe9   : > { %v2974_v17 = vadd.f32 %v594_v12, %v2755_v43  ;;  %v2977_v33 = vadd.f32 %v659_v63, %v2757_v44  ;;  %v881_v63 = vld [vmem:[#allocation3 + $0x38] sm:$0xff]  ;;  %1410 = vmatpush.msra.mxu2 %v945_v0 }
  0xea   : > { %v3838_v32 = vmax.f32 %v2968_v27, 0.0  ;;  %v3839_v28 = vmax.f32 %v2971_v46, 0.0  ;;  %v977_v12 = vld [vmem:[#allocation3 + $0x338] sm:$0xff]  ;;  %1280 = vmatpush.msra.mxu0 %v881_v63 }
  0xeb   : > { %v3841_v41 = vmax.f32 %v2974_v17, 0.0  ;;  %v3842_v1 = vmax.f32 %v2977_v33, 0.0  ;;  %1475 = vmatpush.msra.mxu3 %v977_v12 }
  0xec   : > { %1178 = vmatmul.f32.gmra.mxu2 %v3838_v32  ;;  %1243 = vmatmul.f32.gmra.mxu3 %v3839_v28 }
  0xed   : > { %1051 = vmatmul.f32.gmra.mxu0 %v3841_v41  ;;  %1116 = vmatmul.f32.gmra.mxu1 %v3842_v1 }
  0xef   : > { %v724_v39 = vpop.f32.mrf.mxu2  ;;  %v789_v38 = vpop.f32.mrf.mxu3 }
  0xf0   : > { %v2992_v60 = vadd.f32 %v724_v39, %v2767_v54  ;;  %v2995_v32 = vadd.f32 %v789_v38, %v2769_v55  ;;  %v597_v28 = vpop.f32.mrf.mxu0  ;;  %v662_v37 = vpop.f32.mrf.mxu1  ;;  %v943_v38 = vld [vmem:[#allocation3 + $0x228] sm:$0xff] }
  0xf1   : > { %v2998_v41 = vadd.f32 %v597_v28, %v2755_v43  ;;  %v3001_v1 = vadd.f32 %v662_v37, %v2757_v44  ;;  %v879_v37 = vld [vmem:[#allocation3 + $0x28] sm:$0xff]  ;;  %1411 = vmatpush.msra.mxu2 %v943_v38 }
  0xf2   : > { %v3846_v0 = vmax.f32 %v2992_v60, 0.0  ;;  %v3847_v63 = vmax.f32 %v2995_v32, 0.0  ;;  %v975_v28 = vld [vmem:[#allocation3 + $0x328] sm:$0xff]  ;;  %1281 = vmatpush.msra.mxu0 %v879_v37 }
  0xf3   : > { %v3849_v12 = vmax.f32 %v2998_v41, 0.0  ;;  %v3850_v39 = vmax.f32 %v3001_v1, 0.0  ;;  %1476 = vmatpush.msra.mxu3 %v975_v28 }
  0xf4   : > { %1181 = vmatmul.f32.gmra.mxu2 %v3846_v0  ;;  %1246 = vmatmul.f32.gmra.mxu3 %v3847_v63 }
  0xf5   : > { %1054 = vmatmul.f32.gmra.mxu0 %v3849_v12  ;;  %1119 = vmatmul.f32.gmra.mxu1 %v3850_v39 }
  0xf7   : > { %v727_v23 = vpop.f32.mrf.mxu2  ;;  %v792_v22 = vpop.f32.mrf.mxu3 }
  0xf8   : > { %v3016_v36 = vadd.f32 %v727_v23, %v2767_v54  ;;  %v3019_v0 = vadd.f32 %v792_v22, %v2769_v55  ;;  %v600_v63 = vpop.f32.mrf.mxu0  ;;  %v665_v21 = vpop.f32.mrf.mxu1  ;;  %v941_v22 = vld [vmem:[#allocation3 + $0x218] sm:$0xff] }
  0xf9   : > { %v3022_v12 = vadd.f32 %v600_v63, %v2755_v43  ;;  %v3025_v39 = vadd.f32 %v665_v21, %v2757_v44  ;;  %v877_v21 = vld [vmem:[#allocation3 + $0x18] sm:$0xff]  ;;  %1412 = vmatpush.msra.mxu2 %v941_v22 }
  0xfa   : > { %v3854_v38 = vmax.f32 %v3016_v36, 0.0  ;;  %v3855_v37 = vmax.f32 %v3019_v0, 0.0  ;;  %v973_v63 = vld [vmem:[#allocation3 + $0x318] sm:$0xff]  ;;  %1282 = vmatpush.msra.mxu0 %v877_v21 }
  0xfb   : > { %v3857_v28 = vmax.f32 %v3022_v12, 0.0  ;;  %v3858_v23 = vmax.f32 %v3025_v39, 0.0  ;;  %1477 = vmatpush.msra.mxu3 %v973_v63 }
  0xfc   : > { %1184 = vmatmul.f32.gmra.mxu2 %v3854_v38  ;;  %1249 = vmatmul.f32.gmra.mxu3 %v3855_v37 }
  0xfd   : > { %1057 = vmatmul.f32.gmra.mxu0 %v3857_v28  ;;  %1122 = vmatmul.f32.gmra.mxu1 %v3858_v23 }
  0xfe   : > { %1478 = vmatpush.msra.mxu3 %v971_v53 }
  0xff   : > { %v730_v7 = vpop.f32.mrf.mxu2  ;;  %v795_v6 = vpop.f32.mrf.mxu3 }
 0x100   : > { %v3040_v20 = vadd.f32 %v730_v7, %v2767_v54  ;;  %v3043_v38 = vadd.f32 %v795_v6, %v2769_v55  ;;  %v603_v37 = vpop.f32.mrf.mxu0  ;;  %v668_v5 = vpop.f32.mrf.mxu1  ;;  %v875_v6 = vld [vmem:[#allocation3 + $0x8] sm:$0xff] }
 0x101   : > { %v3046_v28 = vadd.f32 %v603_v37, %v2755_v43  ;;  %v3049_v23 = vadd.f32 %v668_v5, %v2757_v44  ;;  %v907_v37 = vld [vmem:[#allocation3 + $0x108] sm:$0xff]  ;;  %1283 = vmatpush.msra.mxu0 %v875_v6 }
 0x102   : > { %3898 = vst [vmem:[#allocation11_spill] sm:$0xff] %v3043_v38  ;;  %v3862_v22 = vmax.f32 %v3040_v20, 0.0  ;;  %v3863_v21 = vmax.f32 %v3043_v38, 0.0  ;;  %v939_v5 = vld [vmem:[#allocation3 + $0x208] sm:$0xff]  ;;  %1348 = vmatpush.msra.mxu1 %v907_v37 }
 0x103   : > { %3899 = vst [vmem:[#allocation12_spill] sm:$0xff] %v3046_v28  ;;  %v3866_v63 = vmax.f32 %v3046_v28, 0.0  ;;  %v3867_v7 = vmax.f32 %v3049_v23, 0.0  ;;  %1413 = vmatpush.msra.mxu2 %v939_v5 }
 0x104   : > { %3900 = vst [vmem:[#allocation13_spill] sm:$0xff] %v3049_v23  ;;  %1187 = vmatmul.f32.gmra.mxu2 %v3862_v22  ;;  %1252 = vmatmul.f32.gmra.mxu3 %v3863_v21 }
 0x105   : > { %1060 = vmatmul.f32.gmra.mxu0 %v3866_v63  ;;  %1125 = vmatmul.f32.gmra.mxu1 %v3867_v7 }
 0x107   : > { %v733_v52 = vpop.f32.mrf.mxu2  ;;  %v798_v4 = vpop.f32.mrf.mxu3 }
 0x108   : > { %v3064_v22 = vadd.f32 %v733_v52, %v2767_v54  ;;  %v3067_v21 = vadd.f32 %v798_v4, %v2769_v55  ;;  %v606_v38 = vpop.f32.mrf.mxu0  ;;  %v671_v28 = vpop.f32.mrf.mxu1 }
 0x109   : > { %v3070_v63 = vadd.f32 %v606_v38, %v2755_v43  ;;  %v3073_v7 = vadd.f32 %v671_v28, %v2757_v44 }
 0x10a   : > { %3901 = vst [vmem:[#allocation14_spill] sm:$0xff] %v3064_v22  ;;  %v3870_v6 = vmax.f32 %v3064_v22, 0.0  ;;  %v3871_v5 = vmax.f32 %v3067_v21, 0.0 }
 0x10b   : > { %3902 = vst [vmem:[#allocation15_spill] sm:$0xff] %v3073_v7  ;;  %v3872_v53 = vmax.f32 %v3070_v63, 0.0  ;;  %v3873_v52 = vmax.f32 %v3073_v7, 0.0 }
 0x10c   : > { %1190 = vmatmul.f32.gmra.mxu2 %v3870_v6  ;;  %1255 = vmatmul.f32.gmra.mxu3 %v3871_v5 }
 0x10d   : > { %1063 = vmatmul.f32.gmra.mxu0 %v3872_v53  ;;  %1128 = vmatmul.f32.gmra.mxu1 %v3873_v52 }
 0x10f   : > { %v736_v38 = vpop.f32.mrf.mxu2  ;;  %v801_v28 = vpop.f32.mrf.mxu3 }
 0x110   : > { %v3088_v37 = vadd.f32 %v736_v38, %v2767_v54  ;;  %v3091_v4 = vadd.f32 %v801_v28, %v2769_v55  ;;  %v609_v23 = vpop.f32.mrf.mxu0  ;;  %v674_v22 = vpop.f32.mrf.mxu1 }
 0x111   : > { %v3094_v6 = vadd.f32 %v609_v23, %v2755_v43  ;;  %v3097_v5 = vadd.f32 %v674_v22, %v2757_v44  ;;  %v1575_v23 = vld [vmem:[%s3806_s5 + $0x78] sm:$0xff] }
 0x112   : > { %3903 = vst [vmem:[#allocation16_spill] sm:$0xff] %v3088_v37  ;;  %v3875_v53 = vmax.f32 %v3088_v37, 0.0  ;;  %v3876_v52 = vmax.f32 %v3091_v4, 0.0  ;;  %v1591_v22 = vld [vmem:[%s3806_s5 + $0xf8] sm:$0xff]  ;;  %1596 = vmatpush.msrb.mxu0 %v1575_v23 }
 0x113   : > { %3904 = vst [vmem:[#allocation17_spill] sm:$0xff] %v3091_v4  ;;  %v3877_v7 = vmax.f32 %v3094_v6, 0.0  ;;  %v3879_v38 = vmax.f32 %v3097_v5, 0.0  ;;  %1661 = vmatpush.msrb.mxu1 %v1591_v22 }
 0x114   : > { %3905 = vst [vmem:[#allocation18_spill] sm:$0xff] %v3094_v6  ;;  %1193 = vmatmul.f32.gmra.mxu2 %v3875_v53  ;;  %1258 = vmatmul.f32.gmra.mxu3 %v3876_v52 }
 0x115   : > { %3906 = vst [vmem:[#allocation19_spill] sm:$0xff] %v3097_v5  ;;  %1066 = vmatmul.f32.gmra.mxu0 %v3877_v7  ;;  %1131 = vmatmul.f32.gmra.mxu1 %v3879_v38 }
 0x117   : > { %v739_v28 = vpop.f32.mrf.mxu2  ;;  %v804_v53 = vpop.f32.mrf.mxu3 }
 0x118   : > { %v3118_v52 = vadd.f32 %v739_v28, %v2767_v54  ;;  %v3121_v7 = vadd.f32 %v804_v53, %v2769_v55  ;;  %v612_v5 = vpop.f32.mrf.mxu0  ;;  %v677_v38 = vpop.f32.mrf.mxu1 }
 0x119   : > { %v3124_v6 = vadd.f32 %v612_v5, %v2755_v43  ;;  %v3127_v4 = vadd.f32 %v677_v38, %v2757_v44  ;;  %v1574_v43 = vld [vmem:[%s3806_s5 + $0x70] sm:$0xff] }
 0x11a   : > { %v3886_v37 = vmax.f32 %v3118_v52, 0.0  ;;  %v3885_v23 = vmax.f32 %v3121_v7, 0.0  ;;  %v1590_v44 = vld [vmem:[%s3806_s5 + $0xf0] sm:$0xff]  ;;  %1597 = vmatpush.msrb.mxu0 %v1574_v43 }
 0x11b   : > { %3907 = vst [vmem:[#allocation20_spill] sm:$0xff] %v3127_v4  ;;  %v3883_v22 = vmax.f32 %v3124_v6, 0.0  ;;  %v3884_v28 = vmax.f32 %v3127_v4, 0.0  ;;  %1662 = vmatpush.msrb.mxu1 %v1590_v44 }
 0x11c   : > { %1196 = vmatmul.f32.gmra.mxu2 %v3886_v37  ;;  %1261 = vmatmul.f32.gmra.mxu3 %v3885_v23 }
 0x11d   : > { %1069 = vmatmul.f32.gmra.mxu0 %v3883_v22  ;;  %1134 = vmatmul.f32.gmra.mxu1 %v3884_v28  ;;  %v3156_v28 = vld [vmem:[%s3805_s4] sm:$0x3] }
 0x11e   : > { %3909 = vst [vmem:[#allocation22_spill] sm:$0xff] %v3156_v28  ;;  %v3161_v44 = vperm.slane %v3156_v28, 0 }
 0x11f   : > { %v742_v5 = vpop.f32.mrf.mxu2  ;;  %v807_v53 = vpop.f32.mrf.mxu3 }
 0x120   : > { %v3148_v38 = vadd.f32 %v742_v5, %v2767_v54  ;;  %v3151_v22 = vadd.f32 %v807_v53, %v2769_v55  ;;  %v3910_v54 = vmax.f32 %v2760_v50, 0.0  ;;  %v3911_v55 = vmax.f32 %v2763_v51, 0.0  ;;  %v1573_v5 = vld [vmem:[%s3806_s5 + $0x68] sm:$0xff] }
 0x121   : > { %v1589_v53 = vld [vmem:[%s3806_s5 + $0xe8] sm:$0xff]  ;;  %1598 = vmatpush.msrb.mxu0 %v1573_v5  ;;  %v3912_v50 = vmax.f32 %v2776_v61, 0.0  ;;  %v3913_v51 = vmax.f32 %v2779_v62, 0.0  ;;  %v1572_v5 = vld [vmem:[%s3806_s5 + $0x60] sm:$0xff] }
 0x122   : > { %3908 = vst [vmem:[#allocation21_spill] sm:$0xff] %v3151_v22  ;;  %v3888_v23 = vmax.f32 %v3148_v38, 0.0  ;;  %v3890_v37 = vmax.f32 %v3151_v22, 0.0  ;;  %v1025_v4 = vpop.f32.mrf.mxu0  ;;  %v1090_v43 = vpop.f32.mrf.mxu1  ;;  %1663 = vmatpush.msrb.mxu1 %v1589_v53 }
 0x123   : > { %1599 = vmatpush.msrb.mxu0 %v1572_v5  ;;  %v3919_v5 = vmax.f32 %v2809_v19, 0.0 }
 0x124   : > { %1199 = vmatmul.f32.gmra.mxu2 %v3888_v23  ;;  %1264 = vmatmul.f32.gmra.mxu3 %v3890_v37  ;;  %v1026_v23 = vadd.f32 %v1025_v4, %v3161_v44  ;;  %v1588_v4 = vld [vmem:[%s3806_s5 + $0xe0] sm:$0xff] }
 0x125   : > { %1284 = vmatmul.f32.vlgmr.msra.gmra.mxu0 %v3910_v54  ;;  %1349 = vmatmul.f32.vlgmr.msra.gmra.mxu1 %v3911_v55  ;;  %v3914_v54 = vmax.f32 %v2782_v2, 0.0  ;;  %v3915_v55 = vmax.f32 %v2785_v3, 0.0 }
 0x126   : > { %v1091_v22 = vadd.f32 %v1090_v43, %v1026_v23  ;;  %1664 = vmatpush.msrb.mxu1 %v1588_v4 }
 0x12a   : > { %v1028_v28 = vpop.f32.mrf.mxu0  ;;  %v1093_v37 = vpop.f32.mrf.mxu1 }
 0x12b   : > { %v1029_v62 = vadd.f32 %v1028_v28, %v3161_v44 }
 0x12c   : > { %1414 = vmatmul.f32.vlgmr.msra.gmra.mxu2 %v3912_v50  ;;  %1479 = vmatmul.f32.vlgmr.msra.gmra.mxu3 %v3913_v51  ;;  %v3916_v51 = vmax.f32 %v2800_v13, 0.0 }
 0x12d   : > { %1287 = vmatmul.f32.gmra.mxu0 %v3914_v54  ;;  %1352 = vmatmul.f32.gmra.mxu1 %v3915_v55  ;;  %v1094_v50 = vadd.f32 %v1093_v37, %v1029_v62  ;;  %v3917_v54 = vmax.f32 %v2803_v14, 0.0  ;;  %v3918_v55 = vmax.f32 %v2806_v18, 0.0  ;;  %v1587_v37 = vld [vmem:[%s3806_s5 + $0xd8] sm:$0xff]  ;;  %v3920_v62 = vmax.f32 %v2824_v29, 0.0 }
 0x12e   : > { %1665 = vmatpush.msrb.mxu1 %v1587_v37  ;;  %v3924_v37 = vmax.f32 %v2848_v47, 0.0 }
 0x12f   : > { %v1155_v61 = vpop.f32.mrf.mxu2  ;;  %v1220_v23 = vpop.f32.mrf.mxu3 }
 0x130   : > { %v1156_v43 = vadd.f32 %v1155_v61, %v1091_v22  ;;  %v1571_v22 = vld [vmem:[%s3806_s5 + $0x58] sm:$0xff] }
 0x131   : > { %1600 = vmatpush.msrb.mxu0 %v1571_v22 }
 0x132   : > { %v3193_v2 = vadd.f32 %v1220_v23, %v1156_v43  ;;  %v1031_v53 = vpop.f32.mrf.mxu0  ;;  %v1096_v3 = vpop.f32.mrf.mxu1  ;;  %v3921_v43 = vmax.f32 %v2827_v30, 0.0 }
 0x133   : > { %v1032_v14 = vadd.f32 %v1031_v53, %v3161_v44  ;;  %v1570_v53 = vld [vmem:[%s3806_s5 + $0x50] sm:$0xff] }
 0x134   : > { %1417 = vmatmul.f32.gmra.mxu2 %v3916_v51  ;;  %1482 = vmatmul.f32.gmra.mxu3 %v3917_v54  ;;  %v3922_v51 = vmax.f32 %v2830_v34, 0.0  ;;  %v3923_v54 = vmax.f32 %v2833_v35, 0.0 }
 0x135   : > { %1290 = vmatmul.f32.gmra.mxu0 %v3918_v55  ;;  %1355 = vmatmul.f32.gmra.mxu1 %v3919_v5  ;;  %v1097_v23 = vadd.f32 %v1096_v3, %v1032_v14  ;;  %v1586_v3 = vld [vmem:[%s3806_s5 + $0xd0] sm:$0xff]  ;;  %v3927_v14 = vmax.f32 %v2857_v59, 0.0 }
 0x136   : > { %1601 = vmatpush.msrb.mxu0 %v1570_v53  ;;  %1666 = vmatpush.msrb.mxu1 %v1586_v3  ;;  %v3930_v53 = vmax.f32 %v2878_v25, 0.0  ;;  %v3931_v3 = vmax.f32 %v2881_v26, 0.0 }
 0x137   : > { %v1158_v13 = vpop.f32.mrf.mxu2  ;;  %v1223_v28 = vpop.f32.mrf.mxu3 }
 0x138   : > { %v1159_v4 = vadd.f32 %v1158_v13, %v1094_v50  ;;  %v3925_v13 = vmax.f32 %v2851_v48, 0.0 }
 0x13a   : > { %v3210_v18 = vadd.f32 %v1223_v28, %v1159_v4  ;;  %v1034_v61 = vpop.f32.mrf.mxu0  ;;  %v1099_v19 = vpop.f32.mrf.mxu1  ;;  %v3926_v28 = vmax.f32 %v2854_v58, 0.0  ;;  %v1569_v4 = vld [vmem:[%s3806_s5 + $0x48] sm:$0xff] }
 0x13b   : > { %v1035_v30 = vadd.f32 %v1034_v61, %v3161_v44  ;;  %v1585_v61 = vld [vmem:[%s3806_s5 + $0xc8] sm:$0xff]  ;;  %1602 = vmatpush.msrb.mxu0 %v1569_v4  ;;  %v1583_v4 = vld [vmem:[%s3806_s5 + $0xb8] sm:$0xff] }
 0x13c   : > { %1420 = vmatmul.f32.gmra.mxu2 %v3920_v62  ;;  %1485 = vmatmul.f32.gmra.mxu3 %v3921_v43 }
 0x13d   : > { %1293 = vmatmul.f32.gmra.mxu0 %v3922_v51  ;;  %1358 = vmatmul.f32.gmra.mxu1 %v3923_v54  ;;  %v1100_v22 = vadd.f32 %v1099_v19, %v1035_v30  ;;  %v3928_v51 = vmax.f32 %v2872_v15, 0.0  ;;  %v3929_v54 = vmax.f32 %v2875_v16, 0.0 }
 0x13e   : > { %1667 = vmatpush.msrb.mxu1 %v1585_v61 }
 0x13f   : > { %v1161_v29 = vpop.f32.mrf.mxu2  ;;  %v1226_v50 = vpop.f32.mrf.mxu3 }
 0x140   : > { %v1162_v55 = vadd.f32 %v1161_v29, %v1097_v23  ;;  %v1568_v29 = vld [vmem:[%s3806_s5 + $0x40] sm:$0xff] }
 0x141   : > { %1603 = vmatpush.msrb.mxu0 %v1568_v29 }
 0x142   : > { %v3227_v34 = vadd.f32 %v1226_v50, %v1162_v55  ;;  %v1037_v5 = vpop.f32.mrf.mxu0  ;;  %v1102_v35 = vpop.f32.mrf.mxu1  ;;  %v1584_v50 = vld [vmem:[%s3806_s5 + $0xc0] sm:$0xff] }
 0x143   : > { %v1038_v48 = vadd.f32 %v1037_v5, %v3161_v44  ;;  %1668 = vmatpush.msrb.mxu1 %v1584_v50 }
 0x144   : > { %1423 = vmatmul.f32.gmra.mxu2 %v3924_v37  ;;  %1488 = vmatmul.f32.gmra.mxu3 %v3925_v13  ;;  %v3933_v37 = vmax.f32 %v2899_v56, 0.0  ;;  %v3934_v13 = vmax.f32 %v2902_v9, 0.0 }
 0x145   : > { %1296 = vmatmul.f32.gmra.mxu0 %v3926_v28  ;;  %1361 = vmatmul.f32.gmra.mxu1 %v3927_v14  ;;  %v1103_v43 = vadd.f32 %v1102_v35, %v1038_v48  ;;  %v3935_v28 = vmax.f32 %v2905_v10, 0.0  ;;  %v1567_v14 = vld [vmem:[%s3806_s5 + $0x38] sm:$0xff] }
 0x146   : > { %1604 = vmatpush.msrb.mxu0 %v1567_v14  ;;  %1669 = vmatpush.msrb.mxu1 %v1583_v4  ;;  %v3947_v14 = vmax.f32 %v2977_v33, 0.0  ;;  %v1564_v4 = vld [vmem:[%s3806_s5 + $0x20] sm:$0xff]  ;;  %v3948_v33 = vmax.f32 %v2992_v60, 0.0 }
 0x147   : > { %v1164_v47 = vpop.f32.mrf.mxu2  ;;  %v1229_v19 = vpop.f32.mrf.mxu3 }
 0x148   : > { %v1165_v23 = vadd.f32 %v1164_v47, %v1100_v22  ;;  %v3932_v22 = vmax.f32 %v2896_v49, 0.0 }
 0x14a   : > { %v3244_v58 = vadd.f32 %v1229_v19, %v1165_v23  ;;  %v1040_v62 = vpop.f32.mrf.mxu0  ;;  %v1105_v59 = vpop.f32.mrf.mxu1  ;;  %v3936_v23 = vmax.f32 %v2920_v57, 0.0 }
 0x14b   : > { %v1041_v16 = vadd.f32 %v1040_v62, %v3161_v44  ;;  %v3937_v62 = vmax.f32 %v2923_v8, 0.0 }
 0x14c   : > { %1426 = vmatmul.f32.gmra.mxu2 %v3928_v51  ;;  %1491 = vmatmul.f32.gmra.mxu3 %v3929_v54  ;;  %v1566_v51 = vld [vmem:[%s3806_s5 + $0x30] sm:$0xff] }
 0x14d   : > { %1299 = vmatmul.f32.gmra.mxu0 %v3930_v53  ;;  %1364 = vmatmul.f32.gmra.mxu1 %v3931_v3  ;;  %v1106_v35 = vadd.f32 %v1105_v59, %v1041_v16  ;;  %v3938_v59 = vmax.f32 %v2926_v24, 0.0  ;;  %v1582_v54 = vld [vmem:[%s3806_s5 + $0xb0] sm:$0xff]  ;;  %v3942_v16 = vmax.f32 %v2950_v42, 0.0 }
 0x14e   : > { %1605 = vmatpush.msrb.mxu0 %v1566_v51  ;;  %1670 = vmatpush.msrb.mxu1 %v1582_v54  ;;  %v1562_v51 = vld [vmem:[%s3806_s5 + $0x10] sm:$0xff] }
 0x14f   : > { %v1167_v15 = vpop.f32.mrf.mxu2  ;;  %v1232_v30 = vpop.f32.mrf.mxu3  ;;  %v1578_v54 = vld [vmem:[%s3806_s5 + $0x90] sm:$0xff] }
 0x150   : > { %v1168_v55 = vadd.f32 %v1167_v15, %v1103_v43  ;;  %v3939_v43 = vmax.f32 %v2929_v31, 0.0  ;;  %v3940_v15 = vmax.f32 %v2944_v11, 0.0 }
 0x152   : > { %v3261_v25 = vadd.f32 %v1232_v30, %v1168_v55  ;;  %v1043_v5 = vpop.f32.mrf.mxu0  ;;  %v1108_v26 = vpop.f32.mrf.mxu1  ;;  %v3941_v30 = vmax.f32 %v2947_v40, 0.0  ;;  %v3943_v55 = vmax.f32 %v2953_v45, 0.0  ;;  %v3944_v45 = vmax.f32 %v2968_v27, 0.0 }
 0x153   : > { %v1044_v56 = vadd.f32 %v1043_v5, %v3161_v44  ;;  %v1565_v5 = vld [vmem:[%s3806_s5 + $0x28] sm:$0xff] }
 0x154   : > { %1429 = vmatmul.f32.gmra.mxu2 %v3932_v22  ;;  %1494 = vmatmul.f32.gmra.mxu3 %v3933_v37 }
 0x155   : > { %1302 = vmatmul.f32.gmra.mxu0 %v3934_v13  ;;  %1367 = vmatmul.f32.gmra.mxu1 %v3935_v28  ;;  %v1109_v48 = vadd.f32 %v1108_v26, %v1044_v56  ;;  %v1581_v26 = vld [vmem:[%s3806_s5 + $0xa8] sm:$0xff]  ;;  %v3945_v13 = vmax.f32 %v2971_v46, 0.0  ;;  %v3946_v28 = vmax.f32 %v2974_v17, 0.0  ;;  %v3949_v56 = vmax.f32 %v2995_v32, 0.0 }
 0x156   : > { %1606 = vmatpush.msrb.mxu0 %v1565_v5  ;;  %1671 = vmatpush.msrb.mxu1 %v1581_v26  ;;  %v1577_v5 = vld [vmem:[%s3806_s5 + $0x88] sm:$0xff] }
 0x157   : > { %v1170_v49 = vpop.f32.mrf.mxu2  ;;  %v1235_v61 = vpop.f32.mrf.mxu3 }
 0x158   : > { %v1171_v47 = vadd.f32 %v1170_v49, %v1106_v35  ;;  %v1580_v49 = vld [vmem:[%s3806_s5 + $0xa0] sm:$0xff]  ;;  %1607 = vmatpush.msrb.mxu0 %v1564_v4 }
 0x159   : > { %1672 = vmatpush.msrb.mxu1 %v1580_v49  ;;  %v1576_v49 = vld [vmem:[%s3806_s5 + $0x80] sm:$0xff] }
 0x15a   : > { %v3278_v9 = vadd.f32 %v1235_v61, %v1171_v47  ;;  %v1046_v19 = vpop.f32.mrf.mxu0  ;;  %v1111_v10 = vpop.f32.mrf.mxu1  ;;  %v3950_v47 = vmax.f32 %v2998_v41, 0.0 }
 0x15b   : > { %v1047_v8 = vadd.f32 %v1046_v19, %v3161_v44  ;;  %v3951_v19 = vmax.f32 %v3001_v1, 0.0  ;;  %v3952_v1 = vmax.f32 %v3016_v36, 0.0 }
 0x15c   : > { %1432 = vmatmul.f32.gmra.mxu2 %v3936_v23  ;;  %1497 = vmatmul.f32.gmra.mxu3 %v3937_v62  ;;  %v3953_v62 = vmax.f32 %v3019_v0, 0.0 }
 0x15d   : > { %1305 = vmatmul.f32.gmra.mxu0 %v3938_v59  ;;  %1370 = vmatmul.f32.gmra.mxu1 %v3939_v43  ;;  %v1112_v50 = vadd.f32 %v1111_v10, %v1047_v8  ;;  %v1563_v10 = vld [vmem:[%s3806_s5 + $0x18] sm:$0xff]  ;;  %v3954_v59 = vmax.f32 %v3022_v12, 0.0  ;;  %v3955_v43 = vmax.f32 %v3025_v39, 0.0  ;;  %v1561_v39 = vld [vmem:[%s3806_s5 + $0x8] sm:$0xff] }
 0x15e   : > { %1608 = vmatpush.msrb.mxu0 %v1563_v10  ;;  %v3957_v8 = vld [vmem:[#allocation11_spill] sm:$0xff] }
 0x15f   : > { %v1173_v57 = vpop.f32.mrf.mxu2  ;;  %v1238_v53 = vpop.f32.mrf.mxu3 }
 0x160   : > { %v1174_v3 = vadd.f32 %v1173_v57, %v1109_v48  ;;  %v1579_v48 = vld [vmem:[%s3806_s5 + $0x98] sm:$0xff]  ;;  %1609 = vmatpush.msrb.mxu0 %v1562_v51 }
 0x161   : > { %1673 = vmatpush.msrb.mxu1 %v1579_v48 }
 0x162   : > { %v3295_v24 = vadd.f32 %v1238_v53, %v1174_v3  ;;  %v3297_v29 = vpop.f32.mrf.mxu0  ;;  %v3299_v31 = vpop.f32.mrf.mxu1  ;;  %1610 = vmatpush.msrb.mxu0 %v1561_v39  ;;  %v3956_v53 = vmax.f32 %v3040_v20, 0.0  ;;  %v3958_v3 = vmax.f32 %v3957_v8, 0.0  ;;  %v3977_v8 = vmax.f32 %v3118_v52, 0.0 }
 0x163   : > { %1674 = vmatpush.msrb.mxu1 %v1578_v54 }
 0x164   : > { %1435 = vmatmul.f32.gmra.mxu2 %v3940_v15  ;;  %1500 = vmatmul.f32.gmra.mxu3 %v3941_v30  ;;  %v3959_v15 = vld [vmem:[#allocation12_spill] sm:$0xff] }
 0x165   : > { %1308 = vmatmul.f32.gmra.mxu0 %v3942_v16  ;;  %1373 = vmatmul.f32.gmra.mxu1 %v3943_v55  ;;  %v3960_v30 = vmax.f32 %v3959_v15, 0.0  ;;  %v3961_v16 = vld [vmem:[#allocation13_spill] sm:$0xff]  ;;  %v3979_v15 = vmax.f32 %v3124_v6, 0.0 }
 0x166   : > { %v3962_v55 = vmax.f32 %v3961_v16, 0.0  ;;  %1675 = vmatpush.msrb.mxu1 %v1577_v5  ;;  %v1756_v6 = vld [vmem:[%s3808_s7 + $0x70] sm:$0xff] }
 0x167   : > { %v1176_v11 = vpop.f32.mrf.mxu2  ;;  %v1241_v35 = vpop.f32.mrf.mxu3 }
 0x168   : > { %v1177_v40 = vadd.f32 %v1176_v11, %v1112_v50  ;;  %v1560_v50 = vld [vmem:[%s3806_s5] sm:$0xff]  ;;  %1676 = vmatpush.msrb.mxu1 %v1576_v49 }
 0x169   : > { %1611 = vmatpush.msrb.mxu0 %v1560_v50  ;;  %v1757_v50 = vld [vmem:[%s3808_s7 + $0x78] sm:$0xff] }
 0x16a   : > { %v3315_v22 = vadd.f32 %v1241_v35, %v1177_v40  ;;  %v3317_v42 = vpop.f32.mrf.mxu0  ;;  %v3319_v37 = vpop.f32.mrf.mxu1  ;;  %v3963_v40 = vld [vmem:[#allocation14_spill] sm:$0xff]  ;;  %1762 = vmatpush.msrb.mxu2 %v1757_v50 }
 0x16c   : > { %1438 = vmatmul.f32.gmra.mxu2 %v3944_v45  ;;  %1503 = vmatmul.f32.gmra.mxu3 %v3945_v13  ;;  %v3964_v45 = vmax.f32 %v3963_v40, 0.0  ;;  %v3965_v13 = vmax.f32 %v3067_v21, 0.0  ;;  %v3969_v21 = vld [vmem:[#allocation16_spill] sm:$0xff] }
 0x16d   : > { %1311 = vmatmul.f32.gmra.mxu0 %v3946_v28  ;;  %1376 = vmatmul.f32.gmra.mxu1 %v3947_v14  ;;  %v3966_v28 = vmax.f32 %v3070_v63, 0.0  ;;  %v3967_v14 = vld [vmem:[#allocation15_spill] sm:$0xff]  ;;  %v3970_v10 = vmax.f32 %v3969_v21, 0.0  ;;  %v3971_v63 = vld [vmem:[#allocation17_spill] sm:$0xff] }
 0x16e   : > { %v3968_v4 = vmax.f32 %v3967_v14, 0.0  ;;  %v3972_v48 = vmax.f32 %v3971_v63, 0.0  ;;  %1763 = vmatpush.msrb.mxu2 %v1756_v6  ;;  %v3985_v14 = vld [vmem:[#allocation22_spill] sm:$0xff]  ;;  %v1530_v63 = vmax.f32 %v3210_v18, 0.0 }
 0x16f   : > { %v3335_v27 = vpop.f32.mrf.mxu2  ;;  %v3337_v46 = vpop.f32.mrf.mxu3  ;;  %v1754_v18 = vld [vmem:[%s3808_s7 + $0x60] sm:$0xff] }
 0x172   : > { %v3339_v61 = vpop.f32.mrf.mxu0  ;;  %v3341_v17 = vpop.f32.mrf.mxu1 }
 0x174   : > { %1441 = vmatmul.f32.gmra.mxu2 %v3948_v33  ;;  %1506 = vmatmul.f32.gmra.mxu3 %v3949_v56 }
 0x175   : > { %1314 = vmatmul.f32.gmra.mxu0 %v3950_v47  ;;  %1379 = vmatmul.f32.gmra.mxu1 %v3951_v19 }
 0x177   : > { %v3357_v60 = vpop.f32.mrf.mxu2  ;;  %v3359_v32 = vpop.f32.mrf.mxu3 }
 0x17a   : > { %v3361_v23 = vpop.f32.mrf.mxu0  ;;  %v3363_v41 = vpop.f32.mrf.mxu1 }
 0x17c   : > { %1444 = vmatmul.f32.gmra.mxu2 %v3952_v1  ;;  %1509 = vmatmul.f32.gmra.mxu3 %v3953_v62  ;;  %v3973_v1 = vld [vmem:[#allocation18_spill] sm:$0xff] }
 0x17d   : > { %1317 = vmatmul.f32.gmra.mxu0 %v3954_v59  ;;  %1382 = vmatmul.f32.gmra.mxu1 %v3955_v43  ;;  %v3974_v62 = vmax.f32 %v3973_v1, 0.0  ;;  %v3975_v59 = vld [vmem:[#allocation19_spill] sm:$0xff] }
 0x17e   : > { %v3976_v43 = vmax.f32 %v3975_v59, 0.0 }
 0x17f   : > { %v3379_v36 = vpop.f32.mrf.mxu2  ;;  %v3381_v0 = vpop.f32.mrf.mxu3 }
 0x182   : > { %v3383_v57 = vpop.f32.mrf.mxu0  ;;  %v3385_v12 = vpop.f32.mrf.mxu1 }
 0x184   : > { %1447 = vmatmul.f32.gmra.mxu2 %v3956_v53  ;;  %1512 = vmatmul.f32.gmra.mxu3 %v3958_v3  ;;  %v3978_v3 = vmax.f32 %v3121_v7, 0.0  ;;  %v1528_v7 = vmax.f32 %v3193_v2, 0.0 }
 0x185   : > { %1320 = vmatmul.f32.gmra.mxu0 %v3960_v30  ;;  %1385 = vmatmul.f32.gmra.mxu1 %v3962_v55  ;;  %v3980_v30 = vld [vmem:[#allocation20_spill] sm:$0xff] }
 0x186   : > { %v3981_v16 = vmax.f32 %v3980_v30, 0.0  ;;  %v1532_v30 = vmax.f32 %v3227_v34, 0.0 }
 0x187   : > { %v3404_v20 = vpop.f32.mrf.mxu2  ;;  %v3406_v26 = vpop.f32.mrf.mxu3 }
 0x18a   : > { %v3408_v11 = vpop.f32.mrf.mxu0  ;;  %v3410_v35 = vpop.f32.mrf.mxu1 }
 0x18c   : > { %1450 = vmatmul.f32.gmra.mxu2 %v3964_v45  ;;  %1515 = vmatmul.f32.gmra.mxu3 %v3965_v13  ;;  %v3982_v45 = vmax.f32 %v3148_v38, 0.0  ;;  %v3983_v13 = vld [vmem:[#allocation21_spill] sm:$0xff] }
 0x18d   : > { %1323 = vmatmul.f32.gmra.mxu0 %v3966_v28  ;;  %1388 = vmatmul.f32.gmra.mxu1 %v3968_v4  ;;  %v3984_v28 = vmax.f32 %v3983_v13, 0.0  ;;  %v3471_v4 = vperm.slane %v3985_v14, 1 }
 0x18f   : > { %v3423_v33 = vpop.f32.mrf.mxu2  ;;  %v3425_v56 = vpop.f32.mrf.mxu3 }
 0x192   : > { %v3427_v47 = vpop.f32.mrf.mxu0  ;;  %v3429_v19 = vpop.f32.mrf.mxu1 }
 0x194   : > { %1453 = vmatmul.f32.gmra.mxu2 %v3970_v10  ;;  %1518 = vmatmul.f32.gmra.mxu3 %v3972_v48  ;;  %v1755_v48 = vld [vmem:[%s3808_s7 + $0x68] sm:$0xff] }
 0x195   : > { %1326 = vmatmul.f32.gmra.mxu0 %v3974_v62  ;;  %1391 = vmatmul.f32.gmra.mxu1 %v3976_v43 }
 0x196   : > { %1764 = vmatpush.msrb.mxu2 %v1755_v48 }
 0x197   : > { %v3439_v51 = vpop.f32.mrf.mxu2  ;;  %v3441_v54 = vpop.f32.mrf.mxu3 }
 0x198   : > { %1765 = vmatpush.msrb.mxu2 %v1754_v18 }
 0x19a   : > { %v3443_v39 = vpop.f32.mrf.mxu0  ;;  %v3445_v53 = vpop.f32.mrf.mxu1 }
 0x19c   : > { %1456 = vmatmul.f32.gmra.mxu2 %v3977_v8  ;;  %1521 = vmatmul.f32.gmra.mxu3 %v3978_v3 }
 0x19d   : > { %1329 = vmatmul.f32.gmra.mxu0 %v3979_v15  ;;  %1394 = vmatmul.f32.gmra.mxu1 %v3981_v16 }
 0x19f   : > { %v3458_v55 = vpop.f32.mrf.mxu2  ;;  %v3460_v5 = vpop.f32.mrf.mxu3 }
 0x1a2   : > { %v1285_v52 = vpop.f32.mrf.mxu0  ;;  %v1350_v40 = vpop.f32.mrf.mxu1 }
 0x1a3   : > { %v1286_v2 = vadd.f32 %v1285_v52, %v3471_v4 }
 0x1a4   : > { %1459 = vmatmul.f32.gmra.mxu2 %v3982_v45  ;;  %1524 = vmatmul.f32.gmra.mxu3 %v3984_v28 }
 0x1a5   : > { %1612 = vmatmul.f32.vlgmr.msrb.gmra.mxu0 %v1528_v7  ;;  %v1351_v1 = vadd.f32 %v1350_v40, %v1286_v2  ;;  %v1534_v2 = vmax.f32 %v3244_v58, 0.0 }
 0x1a7   : > { %v3473_v49 = vpop.f32.mrf.mxu2  ;;  %v3475_v21 = vpop.f32.mrf.mxu3 }
 0x1aa   : > { %v1288_v38 = vpop.f32.mrf.mxu0  ;;  %v1353_v10 = vpop.f32.mrf.mxu1 }
 0x1ab   : > { %v1289_v8 = vadd.f32 %v1288_v38, %v3471_v4  ;;  %v1753_v38 = vld [vmem:[%s3808_s7 + $0x58] sm:$0xff] }
 0x1ac   : > { %1766 = vmatpush.msrb.mxu2 %v1753_v38 }
 0x1ad   : > { %1615 = vmatmul.f32.gmra.mxu0 %v1530_v63  ;;  %v1354_v52 = vadd.f32 %v1353_v10, %v1289_v8 }
 0x1af   : > { %v1415_v62 = vpop.f32.mrf.mxu2  ;;  %v1480_v59 = vpop.f32.mrf.mxu3 }
 0x1b0   : > { %v1416_v43 = vadd.f32 %v1415_v62, %v1351_v1 }
 0x1b2   : > { %v1481_v3 = vadd.f32 %v1480_v59, %v1416_v43  ;;  %v1291_v50 = vpop.f32.mrf.mxu0  ;;  %v1356_v15 = vpop.f32.mrf.mxu1 }
 0x1b3   : > { %v1292_v13 = vadd.f32 %v1291_v50, %v3471_v4  ;;  %v1752_v50 = vld [vmem:[%s3808_s7 + $0x50] sm:$0xff] }
 0x1b4   : > { %v1529_v16 = vmax.f32 %v1481_v3, 0.0  ;;  %v1536_v3 = vmax.f32 %v3261_v25, 0.0  ;;  %1767 = vmatpush.msrb.mxu2 %v1752_v50 }
 0x1b5   : > { %1618 = vmatmul.f32.gmra.mxu0 %v1532_v30  ;;  %v1357_v63 = vadd.f32 %v1356_v15, %v1292_v13  ;;  %v1538_v13 = vmax.f32 %v3278_v9, 0.0  ;;  %v1050_v9 = vadd.f32 %v3297_v29, %v3161_v44  ;;  %v1542_v29 = vmax.f32 %v3315_v22, 0.0 }
 0x1b6   : > { %1677 = vmatmul.f32.vlgmr.msrb.gmra.mxu1 %v1529_v16 }
 0x1b7   : > { %v1418_v40 = vpop.f32.mrf.mxu2  ;;  %v1483_v7 = vpop.f32.mrf.mxu3 }
 0x1b8   : > { %v1419_v45 = vadd.f32 %v1418_v40, %v1354_v52 }
 0x1ba   : > { %v1484_v28 = vadd.f32 %v1483_v7, %v1419_v45  ;;  %v1294_v6 = vpop.f32.mrf.mxu0  ;;  %v1359_v14 = vpop.f32.mrf.mxu1 }
 0x1bb   : > { %v1295_v62 = vadd.f32 %v1294_v6, %v3471_v4 }
 0x1bc   : > { %v1531_v34 = vmax.f32 %v1484_v28, 0.0  ;;  %v1751_v28 = vld [vmem:[%s3808_s7 + $0x48] sm:$0xff] }
 0x1bd   : > { %1621 = vmatmul.f32.gmra.mxu0 %v1534_v2  ;;  %v1360_v30 = vadd.f32 %v1359_v14, %v1295_v62  ;;  %1768 = vmatpush.msrb.mxu2 %v1751_v28 }
 0x1be   : > { %1680 = vmatmul.f32.gmra.mxu1 %v1531_v34 }
 0x1bf   : > { %v1421_v10 = vpop.f32.mrf.mxu2  ;;  %v1486_v48 = vpop.f32.mrf.mxu3 }
 0x1c0   : > { %v1422_v1 = vadd.f32 %v1421_v10, %v1357_v63 }
 0x1c2   : > { %v1487_v59 = vadd.f32 %v1486_v48, %v1422_v1  ;;  %v1297_v43 = vpop.f32.mrf.mxu0  ;;  %v1362_v8 = vpop.f32.mrf.mxu1  ;;  %v1540_v1 = vmax.f32 %v3295_v24, 0.0 }
 0x1c3   : > { %v1298_v52 = vadd.f32 %v1297_v43, %v3471_v4 }
 0x1c4   : > { %v1533_v58 = vmax.f32 %v1487_v59, 0.0  ;;  %v1750_v59 = vld [vmem:[%s3808_s7 + $0x40] sm:$0xff] }
 0x1c5   : > { %1624 = vmatmul.f32.gmra.mxu0 %v1536_v3  ;;  %v1363_v6 = vadd.f32 %v1362_v8, %v1298_v52  ;;  %1769 = vmatpush.msrb.mxu2 %v1750_v59  ;;  %v1115_v8 = vadd.f32 %v3299_v31, %v1050_v9  ;;  %v1749_v31 = vld [vmem:[%s3808_s7 + $0x38] sm:$0xff] }
 0x1c6   : > { %1683 = vmatmul.f32.gmra.mxu1 %v1533_v58 }
 0x1c7   : > { %v1424_v15 = vpop.f32.mrf.mxu2  ;;  %v1489_v16 = vpop.f32.mrf.mxu3  ;;  %v1180_v52 = vadd.f32 %v3335_v27, %v1115_v8  ;;  %1770 = vmatpush.msrb.mxu2 %v1749_v31  ;;  %v1062_v31 = vadd.f32 %v3383_v57, %v3161_v44 }
 0x1c8   : > { %v1425_v18 = vadd.f32 %v1424_v15, %v1360_v30 }
 0x1ca   : > { %v1490_v40 = vadd.f32 %v1489_v16, %v1425_v18  ;;  %v1300_v7 = vpop.f32.mrf.mxu0  ;;  %v1365_v45 = vpop.f32.mrf.mxu1  ;;  %v1053_v18 = vadd.f32 %v3317_v42, %v3161_v44 }
 0x1cb   : > { %v1301_v38 = vadd.f32 %v1300_v7, %v3471_v4 }
 0x1cc   : > { %v1535_v25 = vmax.f32 %v1490_v40, 0.0 }
 0x1cd   : > { %1627 = vmatmul.f32.gmra.mxu0 %v1538_v13  ;;  %v1366_v43 = vadd.f32 %v1365_v45, %v1301_v38  ;;  %v1118_v45 = vadd.f32 %v3319_v37, %v1053_v18  ;;  %v1245_v13 = vadd.f32 %v3337_v46, %v1180_v52  ;;  %v1748_v37 = vld [vmem:[%s3808_s7 + $0x30] sm:$0xff] }
 0x1ce   : > { %1686 = vmatmul.f32.gmra.mxu1 %v1535_v25  ;;  %1771 = vmatpush.msrb.mxu2 %v1748_v37 }
 0x1cf   : > { %v1427_v14 = vpop.f32.mrf.mxu2  ;;  %v1492_v2 = vpop.f32.mrf.mxu3  ;;  %v1183_v38 = vadd.f32 %v3357_v60, %v1118_v45 }
 0x1d0   : > { %v1428_v34 = vadd.f32 %v1427_v14, %v1363_v6 }
 0x1d2   : > { %v1493_v63 = vadd.f32 %v1492_v2, %v1428_v34  ;;  %v1303_v10 = vpop.f32.mrf.mxu0  ;;  %v1368_v48 = vpop.f32.mrf.mxu1  ;;  %v1544_v2 = vmax.f32 %v1245_v13, 0.0  ;;  %v1056_v34 = vadd.f32 %v3339_v61, %v3161_v44  ;;  %v1127_v13 = vadd.f32 %v3385_v12, %v1062_v31  ;;  %v1745_v12 = vld [vmem:[%s3808_s7 + $0x18] sm:$0xff] }
 0x1d3   : > { %v1304_v30 = vadd.f32 %v1303_v10, %v3471_v4 }
 0x1d4   : > { %v1537_v62 = vmax.f32 %v1493_v63, 0.0  ;;  %v1121_v10 = vadd.f32 %v3341_v17, %v1056_v34  ;;  %v1747_v17 = vld [vmem:[%s3808_s7 + $0x28] sm:$0xff] }
 0x1d5   : > { %1630 = vmatmul.f32.gmra.mxu0 %v1540_v1  ;;  %v1369_v7 = vadd.f32 %v1368_v48, %v1304_v30  ;;  %v1248_v48 = vadd.f32 %v3359_v32, %v1183_v38  ;;  %1772 = vmatpush.msrb.mxu2 %v1747_v17 }
 0x1d6   : > { %1689 = vmatmul.f32.gmra.mxu1 %v1537_v62 }
 0x1d7   : > { %v1430_v3 = vpop.f32.mrf.mxu2  ;;  %v1495_v58 = vpop.f32.mrf.mxu3  ;;  %v1546_v8 = vmax.f32 %v1248_v48, 0.0 }
 0x1d8   : > { %v1431_v50 = vadd.f32 %v1430_v3, %v1366_v43  ;;  %v1059_v3 = vadd.f32 %v3361_v23, %v3161_v44 }
 0x1da   : > { %v1496_v24 = vadd.f32 %v1495_v58, %v1431_v50  ;;  %v1306_v15 = vpop.f32.mrf.mxu0  ;;  %v1371_v16 = vpop.f32.mrf.mxu1  ;;  %v1186_v58 = vadd.f32 %v3379_v36, %v1121_v10  ;;  %v1124_v30 = vadd.f32 %v3363_v41, %v1059_v3  ;;  %v1746_v41 = vld [vmem:[%s3808_s7 + $0x20] sm:$0xff] }
 0x1db   : > { %v1307_v42 = vadd.f32 %v1306_v15, %v3471_v4  ;;  %1773 = vmatpush.msrb.mxu2 %v1746_v41 }
 0x1dc   : > { %v1539_v40 = vmax.f32 %v1496_v24, 0.0  ;;  %v1251_v24 = vadd.f32 %v3381_v0, %v1186_v58 }
 0x1dd   : > { %1633 = vmatmul.f32.gmra.mxu0 %v1542_v29  ;;  %v1372_v46 = vadd.f32 %v1371_v16, %v1307_v42  ;;  %1774 = vmatpush.msrb.mxu2 %v1745_v12 }
 0x1de   : > { %1692 = vmatmul.f32.gmra.mxu1 %v1539_v40  ;;  %v1548_v40 = vmax.f32 %v1251_v24, 0.0 }
 0x1df   : > { %v1433_v25 = vpop.f32.mrf.mxu2  ;;  %v1498_v22 = vpop.f32.mrf.mxu3 }
 0x1e0   : > { %v1434_v28 = vadd.f32 %v1433_v25, %v1369_v7  ;;  %v1189_v7 = vadd.f32 %v3404_v20, %v1124_v30  ;;  %v1071_v30 = vadd.f32 %v3443_v39, %v3161_v44 }
 0x1e2   : > { %v1499_v6 = vadd.f32 %v1498_v22, %v1434_v28  ;;  %v1309_v27 = vpop.f32.mrf.mxu0  ;;  %v1374_v14 = vpop.f32.mrf.mxu1  ;;  %v1254_v25 = vadd.f32 %v3406_v26, %v1189_v7 }
 0x1e3   : > { %v1310_v61 = vadd.f32 %v1309_v27, %v3471_v4 }
 0x1e4   : > { %v1541_v63 = vmax.f32 %v1499_v6, 0.0  ;;  %v1550_v27 = vmax.f32 %v1254_v25, 0.0 }
 0x1e5   : > { %1636 = vmatmul.f32.gmra.mxu0 %v1544_v2  ;;  %v1375_v32 = vadd.f32 %v1374_v14, %v1310_v61  ;;  %v1065_v14 = vadd.f32 %v3408_v11, %v3161_v44  ;;  %v1192_v2 = vadd.f32 %v3423_v33, %v1127_v13 }
 0x1e6   : > { %1695 = vmatmul.f32.gmra.mxu1 %v1541_v63 }
 0x1e7   : > { %v1436_v1 = vpop.f32.mrf.mxu2  ;;  %v1501_v9 = vpop.f32.mrf.mxu3  ;;  %v1130_v63 = vadd.f32 %v3410_v35, %v1065_v14  ;;  %v1257_v37 = vadd.f32 %v3425_v56, %v1192_v2  ;;  %v1744_v35 = vld [vmem:[%s3808_s7 + $0x10] sm:$0xff] }
 0x1e8   : > { %v1437_v62 = vadd.f32 %v1436_v1, %v1372_v46  ;;  %1775 = vmatpush.msrb.mxu2 %v1744_v35 }
 0x1e9   : > { %v1195_v61 = vadd.f32 %v3439_v51, %v1130_v63 }
 0x1ea   : > { %v1502_v59 = vadd.f32 %v1501_v9, %v1437_v62  ;;  %v1312_v60 = vpop.f32.mrf.mxu0  ;;  %v1377_v43 = vpop.f32.mrf.mxu1  ;;  %v1552_v9 = vmax.f32 %v1257_v37, 0.0  ;;  %v1068_v62 = vadd.f32 %v3427_v47, %v3161_v44 }
 0x1eb   : > { %v1313_v23 = vadd.f32 %v1312_v60, %v3471_v4 }
 0x1ec   : > { %v1543_v50 = vmax.f32 %v1502_v59, 0.0 }
 0x1ed   : > { %1639 = vmatmul.f32.gmra.mxu0 %v1546_v8  ;;  %v1378_v0 = vadd.f32 %v1377_v43, %v1313_v23  ;;  %v1133_v43 = vadd.f32 %v3429_v19, %v1068_v62  ;;  %v1260_v8 = vadd.f32 %v3441_v54, %v1195_v61  ;;  %v1743_v19 = vld [vmem:[%s3808_s7 + $0x8] sm:$0xff] }
 0x1ee   : > { %1698 = vmatmul.f32.gmra.mxu1 %v1543_v50  ;;  %1776 = vmatpush.msrb.mxu2 %v1743_v19 }
 0x1ef   : > { %v1439_v15 = vpop.f32.mrf.mxu2  ;;  %v1504_v16 = vpop.f32.mrf.mxu3  ;;  %v1198_v24 = vadd.f32 %v3458_v55, %v1133_v43 }
 0x1f0   : > { %v1440_v29 = vadd.f32 %v1439_v15, %v1375_v32  ;;  %v1554_v32 = vmax.f32 %v1260_v8, 0.0 }
 0x1f1   : > { %v1263_v23 = vadd.f32 %v3460_v5, %v1198_v24 }
 0x1f2   : > { %v1505_v18 = vadd.f32 %v1504_v16, %v1440_v29  ;;  %v1315_v36 = vpop.f32.mrf.mxu0  ;;  %v1380_v52 = vpop.f32.mrf.mxu1  ;;  %v1742_v16 = vld [vmem:[%s3808_s7] sm:$0xff]  ;;  %v1136_v29 = vadd.f32 %v3445_v53, %v1071_v30 }
 0x1f3   : > { %v1316_v57 = vadd.f32 %v1315_v36, %v3471_v4  ;;  %1777 = vmatpush.msrb.mxu2 %v1742_v16  ;;  %v1556_v31 = vmax.f32 %v1263_v23, 0.0  ;;  %v1847_v16 = vld [vmem:[%s3810_s9 + $0x20] sm:$0xff] }
 0x1f4   : > { %v1545_v45 = vmax.f32 %v1505_v18, 0.0  ;;  %v1201_v7 = vadd.f32 %v3473_v49, %v1136_v29 }
 0x1f5   : > { %1642 = vmatmul.f32.gmra.mxu0 %v1548_v40  ;;  %v1381_v26 = vadd.f32 %v1380_v52, %v1316_v57 }
 0x1f6   : > { %1701 = vmatmul.f32.gmra.mxu1 %v1545_v45  ;;  %v1266_v53 = vadd.f32 %v3475_v21, %v1201_v7  ;;  %v1850_v21 = vld [vmem:[%s3810_s9 + $0x38] sm:$0xff] }
 0x1f7   : > { %v1442_v22 = vpop.f32.mrf.mxu2  ;;  %v1507_v28 = vpop.f32.mrf.mxu3  ;;  %1912 = vmatpush.msrb.mxu3 %v1850_v21  ;;  %v1846_v7 = vld [vmem:[%s3810_s9 + $0x18] sm:$0xff] }
 0x1f8   : > { %v1443_v42 = vadd.f32 %v1442_v22, %v1378_v0 }
 0x1fa   : > { %v1508_v6 = vadd.f32 %v1507_v28, %v1443_v42  ;;  %v1318_v20 = vpop.f32.mrf.mxu0  ;;  %v1383_v38 = vpop.f32.mrf.mxu1  ;;  %v1558_v42 = vmax.f32 %v1266_v53, 0.0 }
 0x1fb   : > { %v1319_v11 = vadd.f32 %v1318_v20, %v3471_v4 }
 0x1fc   : > { %v1547_v34 = vmax.f32 %v1508_v6, 0.0 }
 0x1fd   : > { %1645 = vmatmul.f32.gmra.mxu0 %v1550_v27  ;;  %v1384_v56 = vadd.f32 %v1383_v38, %v1319_v11 }
 0x1fe   : > { %1704 = vmatmul.f32.gmra.mxu1 %v1547_v34 }
 0x1ff   : > { %v1445_v46 = vpop.f32.mrf.mxu2  ;;  %v1510_v10 = vpop.f32.mrf.mxu3 }
 0x200   : > { %v1446_v48 = vadd.f32 %v1445_v46, %v1381_v26 }
 0x202   : > { %v1511_v33 = vadd.f32 %v1510_v10, %v1446_v48  ;;  %v1321_v1 = vpop.f32.mrf.mxu0  ;;  %v1386_v60 = vpop.f32.mrf.mxu1 }
 0x203   : > { %v1322_v47 = vadd.f32 %v1321_v1, %v3471_v4  ;;  %v3588_v1 = vld [vmem:[%s3807_s6] ss:$0 sm:$0xff] }
 0x204   : > { %v1549_v59 = vmax.f32 %v1511_v33, 0.0 }
 0x205   : > { %1648 = vmatmul.f32.gmra.mxu0 %v1552_v9  ;;  %v1387_v54 = vadd.f32 %v1386_v60, %v1322_v47 }
 0x206   : > { %1707 = vmatmul.f32.gmra.mxu1 %v1549_v59 }
 0x207   : > { %v1448_v3 = vpop.f32.mrf.mxu2  ;;  %v1513_v58 = vpop.f32.mrf.mxu3 }
 0x208   : > { %v1449_v50 = vadd.f32 %v1448_v3, %v1384_v56 }
 0x20a   : > { %v1514_v51 = vadd.f32 %v1513_v58, %v1449_v50  ;;  %v1324_v17 = vpop.f32.mrf.mxu0  ;;  %v1389_v18 = vpop.f32.mrf.mxu1  ;;  %v1848_v58 = vld [vmem:[%s3810_s9 + $0x28] sm:$0xff] }
 0x20b   : > { %v1325_v36 = vadd.f32 %v1324_v17, %v3471_v4 }
 0x20c   : > { %v1551_v15 = vmax.f32 %v1514_v51, 0.0 }
 0x20d   : > { %1651 = vmatmul.f32.gmra.mxu0 %v1554_v32  ;;  %v1390_v41 = vadd.f32 %v1389_v18, %v1325_v36 }
 0x20e   : > { %1710 = vmatmul.f32.gmra.mxu1 %v1551_v15 }
 0x20f   : > { %v1451_v44 = vpop.f32.mrf.mxu2  ;;  %v1516_v39 = vpop.f32.mrf.mxu3 }
 0x210   : > { %v1452_v55 = vadd.f32 %v1451_v44, %v1387_v54 }
 0x212   : > { %v1517_v52 = vadd.f32 %v1516_v39, %v1452_v55  ;;  %v1327_v40 = vpop.f32.mrf.mxu0  ;;  %v1392_v57 = vpop.f32.mrf.mxu1 }
 0x213   : > { %v1328_v25 = vadd.f32 %v1327_v40, %v3471_v4 }
 0x214   : > { %v1553_v45 = vmax.f32 %v1517_v52, 0.0 }
 0x215   : > { %1654 = vmatmul.f32.gmra.mxu0 %v1556_v31  ;;  %v1393_v20 = vadd.f32 %v1392_v57, %v1328_v25  ;;  %v1845_v57 = vld [vmem:[%s3810_s9 + $0x10] sm:$0xff] }
 0x216   : > { %1713 = vmatmul.f32.gmra.mxu1 %v1553_v45 }
 0x217   : > { %v1454_v0 = vpop.f32.mrf.mxu2  ;;  %v1519_v5 = vpop.f32.mrf.mxu3 }
 0x218   : > { %v1455_v13 = vadd.f32 %v1454_v0, %v1390_v41 }
 0x21a   : > { %v1520_v22 = vadd.f32 %v1519_v5, %v1455_v13  ;;  %v1330_v28 = vpop.f32.mrf.mxu0  ;;  %v1395_v26 = vpop.f32.mrf.mxu1 }
 0x21b   : > { %v1331_v2 = vadd.f32 %v1330_v28, %v3471_v4  ;;  %v1849_v4 = vld [vmem:[%s3810_s9 + $0x30] sm:$0xff] }
 0x21c   : > { %v1555_v6 = vmax.f32 %v1520_v22, 0.0  ;;  %1913 = vmatpush.msrb.mxu3 %v1849_v4 }
 0x21d   : > { %1657 = vmatmul.f32.gmra.mxu0 %v1558_v42  ;;  %v1396_v63 = vadd.f32 %v1395_v26, %v1331_v2  ;;  %v1844_v26 = vld [vmem:[%s3810_s9 + $0x8] sm:$0xff] }
 0x21e   : > { %1716 = vmatmul.f32.gmra.mxu1 %v1555_v6  ;;  %1914 = vmatpush.msrb.mxu3 %v1848_v58 }
 0x21f   : > { %v1457_v49 = vpop.f32.mrf.mxu2  ;;  %v1522_v27 = vpop.f32.mrf.mxu3 }
 0x220   : > { %v1458_v14 = vadd.f32 %v1457_v49, %v1393_v20  ;;  %1915 = vmatpush.msrb.mxu3 %v1847_v16  ;;  %v3630_v16 = vld [vmem:[%s3809_s8] ss:$0 sm:$0xff] }
 0x222   : > { %v1523_v34 = vadd.f32 %v1522_v27, %v1458_v14  ;;  %v1613_v38 = vpop.f32.mrf.mxu0  ;;  %1916 = vmatpush.msrb.mxu3 %v1846_v7 }
 0x223   : > { %v1614_v9 = vadd.f32 %v3588_v1, %v1613_v38 }
 0x224   : > { %v1557_v12 = vmax.f32 %v1523_v34, 0.0  ;;  %1917 = vmatpush.msrb.mxu3 %v1845_v57 }
 0x226   : > { %1719 = vmatmul.f32.gmra.mxu1 %v1557_v12  ;;  %1918 = vmatpush.msrb.mxu3 %v1844_v26 }
 0x227   : > { %v1460_v37 = vpop.f32.mrf.mxu2  ;;  %v1525_v10 = vpop.f32.mrf.mxu3 }
 0x228   : > { %v1461_v46 = vadd.f32 %v1460_v37, %v1396_v63 }
 0x22a   : > { %v1526_v48 = vadd.f32 %v1525_v10, %v1461_v46  ;;  %v1616_v11 = vpop.f32.mrf.mxu0 }
 0x22b   : > { %v1617_v56 = vadd.f32 %v3588_v1, %v1616_v11 }
 0x22c   : > { %v1559_v33 = vmax.f32 %v1526_v48, 0.0 }
 0x22e   : > { %1722 = vmatmul.f32.gmra.mxu1 %v1559_v33 }
 0x232   : > { %v1619_v62 = vpop.f32.mrf.mxu0 }
 0x233   : > { %v1678_v61 = vpop.f32.mrf.mxu1  ;;  %v1620_v50 = vadd.f32 %v3588_v1, %v1619_v62  ;;  %v1843_v62 = vld [vmem:[%s3810_s9] sm:$0xff] }
 0x234   : > { %v1679_v59 = vadd.f32 %v1678_v61, %v1614_v9  ;;  %1919 = vmatpush.msrb.mxu3 %v1843_v62 }
 0x236   : > { %v1726_v35 = vmax.f32 %v1679_v59, 0.0 }
 0x238   : > { %1778 = vmatmul.f32.vlgmr.msrb.gmra.mxu2 %v1726_v35 }
 0x23a   : > { %v1622_v60 = vpop.f32.mrf.mxu0 }
 0x23b   : > { %v1681_v43 = vpop.f32.mrf.mxu1  ;;  %v1623_v30 = vadd.f32 %v3588_v1, %v1622_v60 }
 0x23c   : > { %v1682_v8 = vadd.f32 %v1681_v43, %v1617_v56 }
 0x23e   : > { %v1727_v3 = vmax.f32 %v1682_v8, 0.0 }
 0x240   : > { %1781 = vmatmul.f32.gmra.mxu2 %v1727_v3 }
 0x242   : > { %v1625_v47 = vpop.f32.mrf.mxu0 }
 0x243   : > { %v1684_v51 = vpop.f32.mrf.mxu1  ;;  %v1626_v29 = vadd.f32 %v3588_v1, %v1625_v47 }
 0x244   : > { %v1685_v17 = vadd.f32 %v1684_v51, %v1620_v50 }
 0x246   : > { %v1728_v32 = vmax.f32 %v1685_v17, 0.0 }
 0x248   : > { %1784 = vmatmul.f32.gmra.mxu2 %v1728_v32 }
 0x24a   : > { %v1628_v24 = vpop.f32.mrf.mxu0 }
 0x24b   : > { %v1687_v15 = vpop.f32.mrf.mxu1  ;;  %v1629_v18 = vadd.f32 %v3588_v1, %v1628_v24 }
 0x24c   : > { %v1688_v19 = vadd.f32 %v1687_v15, %v1623_v30 }
 0x24e   : > { %v1729_v54 = vmax.f32 %v1688_v19, 0.0 }
 0x250   : > { %1787 = vmatmul.f32.gmra.mxu2 %v1729_v54 }
 0x252   : > { %v1631_v23 = vpop.f32.mrf.mxu0 }
 0x253   : > { %v1690_v44 = vpop.f32.mrf.mxu1  ;;  %v1632_v45 = vadd.f32 %v3588_v1, %v1631_v23 }
 0x254   : > { %v1691_v39 = vadd.f32 %v1690_v44, %v1626_v29 }
 0x256   : > { %v1730_v55 = vmax.f32 %v1691_v39, 0.0 }
 0x258   : > { %1790 = vmatmul.f32.gmra.mxu2 %v1730_v55 }
 0x25a   : > { %v1634_v36 = vpop.f32.mrf.mxu0 }
 0x25b   : > { %v1693_v52 = vpop.f32.mrf.mxu1  ;;  %v1635_v13 = vadd.f32 %v3588_v1, %v1634_v36 }
 0x25c   : > { %v1694_v40 = vadd.f32 %v1693_v52, %v1629_v18 }
 0x25e   : > { %v1731_v31 = vmax.f32 %v1694_v40, 0.0 }
 0x260   : > { %1793 = vmatmul.f32.gmra.mxu2 %v1731_v31 }
 0x262   : > { %v1637_v41 = vpop.f32.mrf.mxu0 }
 0x263   : > { %v1696_v53 = vpop.f32.mrf.mxu1  ;;  %v1638_v6 = vadd.f32 %v3588_v1, %v1637_v41 }
 0x264   : > { %v1697_v0 = vadd.f32 %v1696_v53, %v1632_v45 }
 0x266   : > { %v1732_v5 = vmax.f32 %v1697_v0, 0.0 }
 0x268   : > { %1796 = vmatmul.f32.gmra.mxu2 %v1732_v5 }
 0x26a   : > { %v1640_v25 = vpop.f32.mrf.mxu0 }
 0x26b   : > { %v1699_v22 = vpop.f32.mrf.mxu1  ;;  %v1641_v21 = vadd.f32 %v3588_v1, %v1640_v25 }
 0x26c   : > { %v1700_v28 = vadd.f32 %v1699_v22, %v1635_v13 }
 0x26e   : > { %v1733_v42 = vmax.f32 %v1700_v28, 0.0 }
 0x270   : > { %1799 = vmatmul.f32.gmra.mxu2 %v1733_v42 }
 0x272   : > { %v1643_v27 = vpop.f32.mrf.mxu0 }
 0x273   : > { %v1702_v20 = vpop.f32.mrf.mxu1  ;;  %v1644_v63 = vadd.f32 %v3588_v1, %v1643_v27 }
 0x274   : > { %v1703_v49 = vadd.f32 %v1702_v20, %v1638_v6 }
 0x276   : > { %v1734_v14 = vmax.f32 %v1703_v49, 0.0 }
 0x278   : > { %1802 = vmatmul.f32.gmra.mxu2 %v1734_v14  ;;  %v2486_v14 = vmov 0  }
 0x279   : > { %2380 = vset.pattern.permute.xlu0 %v2486_v14 }
 0x27a   : > { %v1646_v12 = vpop.f32.mrf.mxu0 }
 0x27b   : > { %v1705_v2 = vpop.f32.mrf.mxu1  ;;  %v1647_v11 = vadd.f32 %v3588_v1, %v1646_v12 }
 0x27c   : > { %v1706_v34 = vadd.f32 %v1705_v2, %v1641_v21  ;;  %v2053_v21 = vld [vmem:[#allocation2] sm:$0x1] }
 0x27d   : > { %2056 = vperm.xlu0 %2380, %v2053_v21  }
 0x27e   : > { %v1735_v38 = vmax.f32 %v1706_v34, 0.0 }
 0x280   : > { %1805 = vmatmul.f32.gmra.mxu2 %v1735_v38 }
 0x282   : > { %v1649_v48 = vpop.f32.mrf.mxu0 }
 0x283   : > { %v1708_v37 = vpop.f32.mrf.mxu1  ;;  %v1650_v61 = vadd.f32 %v3588_v1, %v1649_v48 }
 0x284   : > { %v1709_v46 = vadd.f32 %v1708_v37, %v1644_v63 }
 0x286   : > { %v1736_v10 = vmax.f32 %v1709_v46, 0.0 }
 0x288   : > { %1808 = vmatmul.f32.gmra.mxu2 %v1736_v10 }
 0x28a   : > { %v1652_v59 = vpop.f32.mrf.mxu0 }
 0x28b   : > { %v1711_v33 = vpop.f32.mrf.mxu1  ;;  %v1653_v43 = vadd.f32 %v3588_v1, %v1652_v59 }
 0x28c   : > { %v1712_v4 = vadd.f32 %v1711_v33, %v1647_v11 }
 0x28e   : > { %v1737_v9 = vmax.f32 %v1712_v4, 0.0 }
 0x290   : > { %1811 = vmatmul.f32.gmra.mxu2 %v1737_v9 }
 0x292   : > { %v1655_v58 = vpop.f32.mrf.mxu0 }
 0x293   : > { %v1714_v35 = vpop.f32.mrf.mxu1  ;;  %v1656_v47 = vadd.f32 %v3588_v1, %v1655_v58 }
 0x294   : > { %v1715_v56 = vadd.f32 %v1714_v35, %v1650_v61 }
 0x296   : > { %v1738_v60 = vmax.f32 %v1715_v56, 0.0 }
 0x298   : > { %1814 = vmatmul.f32.gmra.mxu2 %v1738_v60 }
 0x29a   : > { %v1658_v30 = vpop.f32.mrf.mxu0 }
 0x29b   : > { %v1717_v8 = vpop.f32.mrf.mxu1  ;;  %v1659_v24 = vadd.f32 %v3588_v1, %v1658_v30 }
 0x29c   : > { %v1718_v3 = vadd.f32 %v1717_v8, %v1653_v43  ;;  %v3667_v8 = vld [vmem:[%s3811_s10] ss:$0 sm:$0xff] }
 0x29e   : > { %v1739_v50 = vmax.f32 %v1718_v3, 0.0 }
 0x2a0   : > { %1817 = vmatmul.f32.gmra.mxu2 %v1739_v50  ;;  %v3673_v50 = vld [vmem:[%s3812_s11] ss:$0 sm:$0xff] }
 0x2a3   : > { %v1720_v51 = vpop.f32.mrf.mxu1 }
 0x2a4   : > { %v1721_v17 = vadd.f32 %v1720_v51, %v1656_v47 }
 0x2a6   : > { %v1740_v32 = vmax.f32 %v1721_v17, 0.0 }
 0x2a8   : > { %1820 = vmatmul.f32.gmra.mxu2 %v1740_v32 }
 0x2ab   : > { %v1723_v15 = vpop.f32.mrf.mxu1 }
 0x2ac   : > { %v1724_v19 = vadd.f32 %v1723_v15, %v1659_v24 }
 0x2ae   : > { %v1741_v54 = vmax.f32 %v1724_v19, 0.0 }
 0x2b0   : > { %1823 = vmatmul.f32.gmra.mxu2 %v1741_v54 }
 0x2bb   : > { %v1779_v29 = vpop.f32.mrf.mxu2 }
 0x2bc   : > { %v1780_v23 = vadd.f32 %v3630_v16, %v1779_v29 }
 0x2be   : > { %v1827_v44 = vmax.f32 %v1780_v23, 0.0 }
 0x2c0   : > { %2309 = vmatmul.msk.f32.vlgmr.msrb.gmra.mxu3 %vm1855_vm1, %v1827_v44 }
 0x2c3   : > { %v1782_v39 = vpop.f32.mrf.mxu2 }
 0x2c4   : > { %v1783_v55 = vadd.f32 %v3630_v16, %v1782_v39 }
 0x2c6   : > { %v1828_v1 = vmax.f32 %v1783_v55, 0.0 }
 0x2c8   : > { %2310 = vmatmul.msk.f32.gmra.mxu3 %vm1855_vm1, %v1828_v1 }
 0x2cb   : > { %v1785_v18 = vpop.f32.mrf.mxu2 }
 0x2cc   : > { %v1786_v36 = vadd.f32 %v3630_v16, %v1785_v18 }
 0x2ce   : > { %v1829_v52 = vmax.f32 %v1786_v36, 0.0 }
 0x2d0   : > { %2311 = vmatmul.msk.f32.gmra.mxu3 %vm1855_vm1, %v1829_v52 }
 0x2d3   : > { %v1788_v40 = vpop.f32.mrf.mxu2 }
 0x2d4   : > { %v1789_v31 = vadd.f32 %v3630_v16, %v1788_v40 }
 0x2d6   : > { %v1830_v7 = vmax.f32 %v1789_v31, 0.0 }
 0x2d8   : > { %2312 = vmatmul.msk.f32.gmra.mxu3 %vm1855_vm1, %v1830_v7 }
 0x2db   : > { %v1791_v45 = vpop.f32.mrf.mxu2 }
 0x2dc   : > { %v1792_v41 = vadd.f32 %v3630_v16, %v1791_v45 }
 0x2de   : > { %v1831_v53 = vmax.f32 %v1792_v41, 0.0 }
 0x2e0   : > { %2313 = vmatmul.msk.f32.gmra.mxu3 %vm1855_vm1, %v1831_v53 }
 0x2e3   : > { %v1794_v0 = vpop.f32.mrf.mxu2 }
 0x2e4   : > { %v1795_v5 = vadd.f32 %v3630_v16, %v1794_v0 }
 0x2e6   : > { %v1832_v13 = vmax.f32 %v1795_v5, 0.0 }
 0x2e8   : > { %2314 = vmatmul.msk.f32.gmra.mxu3 %vm1855_vm1, %v1832_v13 }
 0x2eb   : > { %v1797_v25 = vpop.f32.mrf.mxu2 }
 0x2ec   : > { %v1798_v22 = vadd.f32 %v3630_v16, %v1797_v25 }
 0x2ee   : > { %v1833_v28 = vmax.f32 %v1798_v22, 0.0 }
 0x2f0   : > { %2315 = vmatmul.msk.f32.gmra.mxu3 %vm1855_vm1, %v1833_v28 }
 0x2f3   : > { %v1800_v42 = vpop.f32.mrf.mxu2 }
 0x2f4   : > { %v1801_v57 = vadd.f32 %v3630_v16, %v1800_v42 }
 0x2f6   : > { %v1834_v6 = vmax.f32 %v1801_v57, 0.0 }
 0x2f8   : > { %2316 = vmatmul.msk.f32.gmra.mxu3 %vm1855_vm1, %v1834_v6 }
 0x2fb   : > { %v1803_v20 = vpop.f32.mrf.mxu2 }
 0x2fc   : > { %v1804_v49 = vadd.f32 %v3630_v16, %v1803_v20 }
 0x2fe   : > { %v1835_v27 = vmax.f32 %v1804_v49, 0.0 }
 0x300   : > { %2317 = vmatmul.msk.f32.gmra.mxu3 %vm1855_vm1, %v1835_v27 }
 0x303   : > { %v1806_v2 = vpop.f32.mrf.mxu2 }
 0x304   : > { %v1807_v34 = vadd.f32 %v3630_v16, %v1806_v2 }
 0x306   : > { %v1836_v38 = vmax.f32 %v1807_v34, 0.0 }
 0x308   : > { %2318 = vmatmul.msk.f32.gmra.mxu3 %vm1855_vm1, %v1836_v38 }
 0x30b   : > { %v1809_v12 = vpop.f32.mrf.mxu2 }
 0x30c   : > { %v1810_v26 = vadd.f32 %v3630_v16, %v1809_v12 }
 0x30e   : > { %v1837_v63 = vmax.f32 %v1810_v26, 0.0 }
 0x310   : > { %2319 = vmatmul.msk.f32.gmra.mxu3 %vm1855_vm1, %v1837_v63 }
 0x313   : > { %v1812_v37 = vpop.f32.mrf.mxu2 }
 0x314   : > { %v1813_v46 = vadd.f32 %v3630_v16, %v1812_v37 }
 0x316   : > { %v1838_v10 = vmax.f32 %v1813_v46, 0.0 }
 0x318   : > { %2320 = vmatmul.msk.f32.gmra.mxu3 %vm1855_vm1, %v1838_v10 }
 0x31b   : > { %v1815_v48 = vpop.f32.mrf.mxu2 }
 0x31c   : > { %v1816_v11 = vadd.f32 %v3630_v16, %v1815_v48 }
 0x31e   : > { %v1839_v33 = vmax.f32 %v1816_v11, 0.0 }
 0x320   : > { %2321 = vmatmul.msk.f32.gmra.mxu3 %vm1855_vm1, %v1839_v33 }
 0x323   : > { %v1818_v4 = vpop.f32.mrf.mxu2 }
 0x324   : > { %v1819_v9 = vadd.f32 %v3630_v16, %v1818_v4 }
 0x326   : > { %v1840_v62 = vmax.f32 %v1819_v9, 0.0 }
 0x328   : > { %2322 = vmatmul.msk.f32.gmra.mxu3 %vm1855_vm1, %v1840_v62 }
 0x32b   : > { %v1821_v61 = vpop.f32.mrf.mxu2 }
 0x32c   : > { %v1822_v59 = vadd.f32 %v3630_v16, %v1821_v61 }
 0x32e   : > { %v1841_v35 = vmax.f32 %v1822_v59, 0.0 }
 0x330   : > { %2323 = vmatmul.msk.f32.gmra.mxu3 %vm1855_vm1, %v1841_v35 }
 0x333   : > { %v1824_v56 = vpop.f32.mrf.mxu2 }
 0x334   : > { %v1825_v60 = vadd.f32 %v3630_v16, %v1824_v56 }
 0x336   : > { %v1842_v43 = vmax.f32 %v1825_v60, 0.0 }
 0x338   : > { %2324 = vmatmul.msk.f32.gmra.mxu3 %vm1855_vm1, %v1842_v43 }
 0x343   : > { %v1921_v3 = vpop.f32.mrf.mxu3 }
 0x344   : > { %v1922_v58 = vadd.f32 %v3667_v8, %v1921_v3 }
 0x346   : > { %v1969_v47 = vmax.f32 %v1922_v58, 0.0 }
 0x348   : > { %v1989_v51 = vmul.f32 %v3673_v50, %v1969_v47 }
 0x34a   : > { %v2005_v17 = vsel %vm501_vm0, %v1989_v51, 0.0 }
 0x34b   : > { %v1924_v32 = vpop.f32.mrf.mxu3  ;;  %2006 = vadd.xlane.f32.xlu0 %v2005_v17 }
 0x34c   : > { %v1925_v30 = vadd.f32 %v3667_v8, %v1924_v32 }
 0x34e   : > { %v1970_v24 = vmax.f32 %v1925_v30, 0.0 }
 0x350   : > { %v1990_v15 = vmul.f32 %v3673_v50, %v1970_v24 }
 0x352   : > { %v2008_v19 = vsel %vm501_vm0, %v1990_v15, 0.0 }
 0x353   : > { %v1927_v54 = vpop.f32.mrf.mxu3  ;;  %2009 = vadd.xlane.f32.xlu1 %v2008_v19 }
 0x354   : > { %v1928_v16 = vadd.f32 %v3667_v8, %v1927_v54 }
 0x356   : > { %v1971_v29 = vmax.f32 %v1928_v16, 0.0 }
 0x358   : > { %v1991_v23 = vmul.f32 %v3673_v50, %v1971_v29 }
 0x35a   : > { %v2011_v44 = vsel %vm501_vm0, %v1991_v23, 0.0 }
 0x35b   : > { %v1930_v39 = vpop.f32.mrf.mxu3  ;;  %2012 = vadd.xlane.f32.xlu1 %v2011_v44 }
 0x35c   : > { %v1931_v55 = vadd.f32 %v3667_v8, %v1930_v39 }
 0x35e   : > { %v1972_v1 = vmax.f32 %v1931_v55, 0.0 }
 0x360   : > { %v1992_v18 = vmul.f32 %v3673_v50, %v1972_v1 }
 0x362   : > { %v2014_v36 = vsel %vm501_vm0, %v1992_v18, 0.0 }
 0x363   : > { %v1933_v52 = vpop.f32.mrf.mxu3  ;;  %2015 = vadd.xlane.f32.xlu2 %v2014_v36 }
 0x364   : > { %v1934_v40 = vadd.f32 %v3667_v8, %v1933_v52 }
 0x366   : > { %v1973_v31 = vmax.f32 %v1934_v40, 0.0 }
 0x368   : > { %v1993_v7 = vmul.f32 %v3673_v50, %v1973_v31 }
 0x36a   : > { %v2017_v45 = vsel %vm501_vm0, %v1993_v7, 0.0 }
 0x36b   : > { %v1936_v41 = vpop.f32.mrf.mxu3  ;;  %2018 = vadd.xlane.f32.xlu2 %v2017_v45 }
 0x36c   : > { %v1937_v53 = vadd.f32 %v3667_v8, %v1936_v41  ;;  %v2057_v41 = vpop.permute.xlu0 %2056 }
 0x36e   : > { %v1974_v0 = vmax.f32 %v1937_v53, 0.0 }
 0x370   : > { %v1994_v5 = vmul.f32 %v3673_v50, %v1974_v0  ;;  %v2092_v0 = vlaneseq }
 0x372   : > { %v2020_v13 = vsel %vm501_vm0, %v1994_v5, 0.0 }
 0x373   : > { %v1939_v25 = vpop.f32.mrf.mxu3  ;;  %2021 = vadd.xlane.f32.xlu1 %v2020_v13 }
 0x374   : > { %v1940_v22 = vadd.f32 %v3667_v8, %v1939_v25  ;;  %v3722_v25 = vperm.slane %v2057_v41, 0 }
 0x376   : > { %v1975_v28 = vmax.f32 %v1940_v22, 0.0 }
 0x378   : > { %v1995_v42 = vmul.f32 %v3673_v50, %v1975_v28 }
 0x37a   : > { %v2023_v57 = vsel %vm501_vm0, %v1995_v42, 0.0 }
 0x37b   : > { %v1942_v6 = vpop.f32.mrf.mxu3  ;;  %2024 = vadd.xlane.f32.xlu2 %v2023_v57 }
 0x37c   : > { %v1943_v20 = vadd.f32 %v3667_v8, %v1942_v6 }
 0x37e   : > { %v1976_v49 = vmax.f32 %v1943_v20, 0.0 }
 0x380   : > { %v1996_v27 = vmul.f32 %v3673_v50, %v1976_v49 }
 0x382   : > { %v2026_v14 = vsel %vm501_vm0, %v1996_v27, 0.0 }
 0x383   : > { %v1945_v21 = vpop.f32.mrf.mxu3  ;;  %2027 = vadd.xlane.f32.xlu1 %v2026_v14 }
 0x384   : > { %v1946_v2 = vadd.f32 %v3667_v8, %v1945_v21 }
 0x386   : > { %v1977_v34 = vmax.f32 %v1946_v2, 0.0 }
 0x388   : > { %v1997_v38 = vmul.f32 %v3673_v50, %v1977_v34 }
 0x38a   : > { %v2029_v12 = vsel %vm501_vm0, %v1997_v38, 0.0 }
 0x38b   : > { %v1948_v26 = vpop.f32.mrf.mxu3  ;;  %2030 = vadd.xlane.f32.xlu2 %v2029_v12 }
 0x38c   : > { %v1949_v63 = vadd.f32 %v3667_v8, %v1948_v26 }
 0x38e   : > { %v1978_v37 = vmax.f32 %v1949_v63, 0.0 }
 0x390   : > { %v1998_v46 = vmul.f32 %v3673_v50, %v1978_v37 }
 0x392   : > { %v2032_v10 = vsel %vm501_vm0, %v1998_v46, 0.0 }
 0x393   : > { %v1951_v48 = vpop.f32.mrf.mxu3  ;;  %2033 = vadd.xlane.f32.xlu1 %v2032_v10 }
 0x394   : > { %v1952_v11 = vadd.f32 %v3667_v8, %v1951_v48 }
 0x396   : > { %v1979_v33 = vmax.f32 %v1952_v11, 0.0 }
 0x398   : > { %v1999_v4 = vmul.f32 %v3673_v50, %v1979_v33 }
 0x39a   : > { %v2035_v9 = vsel %vm501_vm0, %v1999_v4, 0.0 }
 0x39b   : > { %v1954_v62 = vpop.f32.mrf.mxu3  ;;  %2036 = vadd.xlane.f32.xlu2 %v2035_v9 }
 0x39c   : > { %v1955_v61 = vadd.f32 %v3667_v8, %v1954_v62 }
 0x39e   : > { %v1980_v59 = vmax.f32 %v1955_v61, 0.0 }
 0x3a0   : > { %v2000_v35 = vmul.f32 %v3673_v50, %v1980_v59 }
 0x3a2   : > { %v2038_v56 = vsel %vm501_vm0, %v2000_v35, 0.0 }
 0x3a3   : > { %v1957_v60 = vpop.f32.mrf.mxu3  ;;  %2039 = vadd.xlane.f32.xlu1 %v2038_v56 }
 0x3a4   : > { %v1958_v43 = vadd.f32 %v3667_v8, %v1957_v60 }
 0x3a6   : > { %v1981_v3 = vmax.f32 %v1958_v43, 0.0 }
 0x3a8   : > { %v2001_v58 = vmul.f32 %v3673_v50, %v1981_v3 }
 0x3aa   : > { %v2041_v47 = vsel %vm501_vm0, %v2001_v58, 0.0 }
 0x3ab   : > { %v1960_v51 = vpop.f32.mrf.mxu3  ;;  %2042 = vadd.xlane.f32.xlu2 %v2041_v47 }
 0x3ac   : > { %v1961_v17 = vadd.f32 %v3667_v8, %v1960_v51 }
 0x3ae   : > { %v1982_v32 = vmax.f32 %v1961_v17, 0.0 }
 0x3b0   : > { %v2002_v30 = vmul.f32 %v3673_v50, %v1982_v32 }
 0x3b2   : > { %v2044_v24 = vsel %vm501_vm0, %v2002_v30, 0.0 }
 0x3b3   : > { %v1963_v15 = vpop.f32.mrf.mxu3  ;;  %2045 = vadd.xlane.f32.xlu1 %v2044_v24 }
 0x3b4   : > { %v1964_v19 = vadd.f32 %v3667_v8, %v1963_v15 }
 0x3b6   : > { %v1983_v54 = vmax.f32 %v1964_v19, 0.0 }
 0x3b8   : > { %v2003_v16 = vmul.f32 %v3673_v50, %v1983_v54 }
 0x3ba   : > { %v2047_v29 = vsel %vm501_vm0, %v2003_v16, 0.0 }
 0x3bb   : > { %v1966_v23 = vpop.f32.mrf.mxu3  ;;  %2048 = vadd.xlane.f32.xlu2 %v2047_v29 }
 0x3bc   : > { %v1967_v44 = vadd.f32 %v3667_v8, %v1966_v23  ;;  %v3724_v8 = vand.u32 127, %v2092_v0 }
 0x3be   : > { %v1984_v39 = vmax.f32 %v1967_v44, 0.0  ;;  %v2095_v22 = vadd.s32 4294967288, %v3724_v8  ;;  %v2099_v57 = vadd.s32 4294967280, %v3724_v8  ;;  %v2103_v20 = vadd.s32 4294967272, %v3724_v8 }
 0x3bf   : > { %v2107_v21 = vadd.s32 4294967264, %v3724_v8  ;;  %v2111_v63 = vadd.s32 4294967256, %v3724_v8  ;;  %v2115_v10 = vadd.s32 4294967248, %v3724_v8  ;;  %v2119_v33 = vadd.s32 4294967240, %v3724_v8 }
 0x3c0   : > { %v2004_v55 = vmul.f32 %v3673_v50, %v1984_v39  ;;  %v2007_v50 = vpop.xlane.xlu0 %2006  ;;  %v2123_v62 = vadd.s32 4294967232, %v3724_v8  ;;  %v2127_v56 = vadd.s32 4294967224, %v3724_v8  ;;  %v2131_v3 = vadd.s32 4294967216, %v3724_v8 }
 0x3c1   : > { %v2060_v42 = vadd.f32 %v3722_v25, %v2007_v50  ;;  %v2135_v32 = vadd.s32 4294967208, %v3724_v8  ;;  %v2139_v19 = vadd.s32 4294967200, %v3724_v8  ;;  %v2143_v23 = vadd.s32 4294967192, %v3724_v8 }
 0x3c2   : > { %v2050_v1 = vsel %vm501_vm0, %v2004_v55, 0.0  ;;  %v2151_v41 = vadd.s32 4294967176, %v3724_v8  ;;  %vm2153_vm0 = vcmask 1048512  }
 0x3c3   : > { %2051 = vadd.xlane.f32.xlu0 %v2050_v1  ;;  %v2094_v38 = vperm.slane %v2060_v42, %v3724_v8  ;;  %v2147_v1 = vadd.s32 4294967184, %v3724_v8 }
 0x3c6   : > { %v2010_v18 = vpop.xlane.xlu1 %2009 }
 0x3c7   : > { %v2061_v28 = vadd.f32 %v3722_v25, %v2010_v18 }
 0x3c9   : > { %v2096_v27 = vperm.slane %v2061_v28, %v2095_v22 }
 0x3cb   : > { %v2098_v46 = vsel %vm2097_vm2, %v2096_v27, %v2094_v38 }
 0x3ce   : > { %v2013_v52 = vpop.xlane.xlu1 %2012 }
 0x3cf   : > { %v2062_v6 = vadd.f32 %v3722_v25, %v2013_v52 }
 0x3d1   : > { %v2100_v12 = vperm.slane %v2062_v6, %v2099_v57 }
 0x3d3   : > { %v2102_v9 = vsel %vm2101_vm3, %v2100_v12, %v2098_v46 }
 0x3d6   : > { %v2016_v36 = vpop.xlane.xlu2 %2015 }
 0x3d7   : > { %v2063_v49 = vadd.f32 %v3722_v25, %v2016_v36 }
 0x3d9   : > { %v2104_v26 = vperm.slane %v2063_v49, %v2103_v20 }
 0x3db   : > { %v2106_v59 = vsel %vm2105_vm4, %v2104_v26, %v2102_v9 }
 0x3de   : > { %v2019_v40 = vpop.xlane.xlu2 %2018 }
 0x3df   : > { %v2064_v2 = vadd.f32 %v3722_v25, %v2019_v40 }
 0x3e1   : > { %v2108_v11 = vperm.slane %v2064_v2, %v2107_v21 }
 0x3e3   : > { %v2110_v51 = vsel %vm2109_vm5, %v2108_v11, %v2106_v59 }
 0x3e6   : > { %v2022_v31 = vpop.xlane.xlu1 %2021 }
 0x3e7   : > { %v2065_v37 = vadd.f32 %v3722_v25, %v2022_v31 }
 0x3e9   : > { %v2112_v35 = vperm.slane %v2065_v37, %v2111_v63 }
 0x3eb   : > { %v2114_v16 = vsel %vm2113_vm6, %v2112_v35, %v2110_v51 }
 0x3ee   : > { %v2025_v7 = vpop.xlane.xlu2 %2024 }
 0x3ef   : > { %v2066_v48 = vadd.f32 %v3722_v25, %v2025_v7 }
 0x3f1   : > { %v2116_v43 = vperm.slane %v2066_v48, %v2115_v10 }
 0x3f3   : > { %v2118_v39 = vsel %vm2117_vm7, %v2116_v43, %v2114_v16 }
 0x3f6   : > { %v2028_v45 = vpop.xlane.xlu1 %2027 }
 0x3f7   : > { %v2067_v4 = vadd.f32 %v3722_v25, %v2028_v45 }
 0x3f9   : > { %v2120_v17 = vperm.slane %v2067_v4, %v2119_v33 }
 0x3fb   : > { %v2122_v36 = vsel %vm2121_vm8, %v2120_v17, %v2118_v39 }
 0x3fe   : > { %v2031_v53 = vpop.xlane.xlu2 %2030 }
 0x3ff   : > { %v2068_v61 = vadd.f32 %v3722_v25, %v2031_v53 }
 0x401   : > { %v2124_v15 = vperm.slane %v2068_v61, %v2123_v62 }
 0x403   : > { %v2126_v40 = vsel %vm2125_vm9, %v2124_v15, %v2122_v36 }
 0x406   : > { %v2034_v5 = vpop.xlane.xlu1 %2033 }
 0x407   : > { %v2069_v60 = vadd.f32 %v3722_v25, %v2034_v5 }
 0x409   : > { %v2128_v29 = vperm.slane %v2069_v60, %v2127_v56 }
 0x40b   : > { %v2130_v7 = vsel %vm2129_vm10, %v2128_v29, %v2126_v40 }
 0x40e   : > { %v2037_v13 = vpop.xlane.xlu2 %2036 }
 0x40f   : > { %v2070_v58 = vadd.f32 %v3722_v25, %v2037_v13 }
 0x411   : > { %v2132_v55 = vperm.slane %v2070_v58, %v2131_v3 }
 0x413   : > { %v2134_v53 = vsel %vm2133_vm11, %v2132_v55, %v2130_v7 }
 0x416   : > { %v2040_v14 = vpop.xlane.xlu1 %2039 }
 0x417   : > { %v2071_v30 = vadd.f32 %v3722_v25, %v2040_v14 }
 0x419   : > { %v2136_v52 = vperm.slane %v2071_v30, %v2135_v32 }
 0x41b   : > { %v2138_v13 = vsel %vm2137_vm12, %v2136_v52, %v2134_v53 }
 0x41e   : > { %v2043_v34 = vpop.xlane.xlu2 %2042 }
 0x41f   : > { %v2072_v54 = vadd.f32 %v3722_v25, %v2043_v34 }
 0x421   : > { %v2140_v31 = vperm.slane %v2072_v54, %v2139_v19 }
 0x423   : > { %v2142_v22 = vsel %vm2141_vm13, %v2140_v31, %v2138_v13 }
 0x426   : > { %v2046_v47 = vpop.xlane.xlu1 %2045 }
 0x427   : > { %v2073_v44 = vadd.f32 %v3722_v25, %v2046_v47 }
 0x429   : > { %v2144_v45 = vperm.slane %v2073_v44, %v2143_v23 }
 0x42b   : > { %v2146_v28 = vsel %vm2145_vm14, %v2144_v45, %v2142_v22 }
 0x42e   : > { %v2049_v24 = vpop.xlane.xlu2 %2048 }
 0x42f   : > { %v2074_v18 = vadd.f32 %v3722_v25, %v2049_v24 }
 0x431   : > { %v2148_v0 = vperm.slane %v2074_v18, %v2147_v1 }
 0x433   : > { %v2150_v57 = vsel %vm2149_vm15, %v2148_v0, %v2146_v28 }
 0x436   : > { %v2052_v5 = vpop.xlane.xlu0 %2051 }
 0x437   : > { %v2075_v50 = vadd.f32 %v3722_v25, %v2052_v5 }
 0x439   : > { %v2152_v42 = vperm.slane %v2075_v50, %v2151_v41 }
 0x43b   : > { %v2154_v8 = vsel %vm2153_vm0, %v2152_v42, %v2150_v57 }
 0x43c   : > { %2156 = vst [vmem:[%s452_s14] sm:$0x1] %v2154_v8 }
 0x43d   : > { %2442 = shalt.err (!%p2439_p8)
}
 0x43e   : > { %2331 = dma.vmem_to_hbm [thread:$0]  (%p2598_p5), %s2169_s17, 16, %s2171_s12, %s2158_s21  }
 0x43f PF: > { %p2343_p9 = scmp.ge.s32.totalorder %s2481_s30, 2  ;;  %s2182_s3 = sand.u32 1, %s2469_s27  }
 0x440   : > { %s2183_s18 = scalar_lea.sflag [#allocation5], %s2182_s3 }
 0x441   : > { %p2338_p10 = pnand %p2343_p9, %p2602_p6 }
 0x443   : > { %p2339_p11 = pneg %p2338_p10 }
 0x445   : > { %2464 = dma.done.wait (%p2339_p11), %s2183_s18, 16  }
 0x446   : > { %2466 = vsyncadd (%p2339_p11), %s2183_s18, 4294967280  ;;  %s3986_s14 = sld [smem:[#allocation9_spill]]  ;;  %p26_p12 = scmp.ge.s32.totalorder %s2585_s15, 4  }
 0x447   : > { %s3987_s29 = sld [smem:[#allocation10_spill]]  ;;  %s3988_s27 = smov %s2473_s28 }
 0x448   : > { %s3990_s30 = smov %s2585_s15  ;;  %28 = sbr.rel (!%p26_p12) target bundleno = 7 (0x7), region = 112 }
 0x44c   : > { %s3989_s28 = smov %s3986_s14 }
 0x44d   :  { %2188 = vsyncpa [#allocation4], 1 }
 0x44e   :  { %2190 = vsyncpa [#allocation4 + $0x1], 1 }
 0x44f   :  { %2191 = vsyncpa [#allocation5], 1 }
 0x450   :  { %2193 = vsyncpa [#allocation5 + $0x1], 1 }

</bundles_post_ra>
